<compile_context>
chip_gen: v7x
topology: tpu7x:2x2x1
jax: 0.10.0
libtpu: 0.0.40
codegen_flags: <defaults>
</compile_context>

<pallas_src>
import jax
import jax.numpy as jnp
from jax.experimental import pallas as pl
from jax.experimental.pallas import tpu as pltpu

M_BRANCHES = 3
EPS = 1e-5
NEG_INF = -1e30


def make_params(key, C, d, M=M_BRANCHES):
    ks = list(jax.random.split(key, 12))

    def kn(k, shape, fan):
        return jax.random.normal(k, shape, jnp.float32) * jnp.sqrt(2.0 / fan)

    P = {}
    # conv branch weights (PyTorch layout: (C_out, C_in, KH, KW)) + biases
    P["w1"] = kn(ks[0], (C, C, 1, 3), C * 3)
    P["w2"] = kn(ks[1], (C, C, 3, 3), C * 9)
    P["w3"] = kn(ks[2], (C, C, 3, 1), C * 3)
    P["b1"] = 0.1 * jax.random.normal(ks[3], (C,), jnp.float32)
    P["b2"] = 0.1 * jax.random.normal(ks[4], (C,), jnp.float32)
    P["b3"] = 0.1 * jax.random.normal(ks[5], (C,), jnp.float32)
    # per-branch BatchNorm params (PyTorch defaults / running stats)
    P["bn_gamma"] = jnp.ones((M, C), jnp.float32)
    P["bn_beta"] = jnp.zeros((M, C), jnp.float32)
    P["bn_mean"] = jnp.zeros((M, C), jnp.float32)
    P["bn_var"] = jnp.ones((M, C), jnp.float32)
    # ContextBlock conv_mask: Conv2d(C, 1, 1)
    P["wmask"] = kn(ks[6], (C,), C)
    P["bmask"] = jnp.zeros((1,), jnp.float32)
    # fc: Conv2d(C, d, 1) + LayerNorm([d,1,1])
    P["wfc"] = kn(ks[7], (d, C), C)
    P["bfc"] = 0.1 * jax.random.normal(ks[8], (d,), jnp.float32)
    P["ln_g"] = jnp.ones((d,), jnp.float32)
    P["ln_b"] = jnp.zeros((d,), jnp.float32)
    # M x Linear(d, C)
    P["wfcs"] = kn(ks[9], (M, C, d), d)
    P["bfcs"] = 0.1 * jax.random.normal(ks[10], (M, C), jnp.float32)
    return P


def skconv2_pallas(x, P, crop=True):
    B, C, H, W = x.shape
    M = M_BRANCHES
    d = P["wfc"].shape[0]
    Hp, Wp = H + 2, W + 2
    Q = H * Wp            # row-strided flat spatial extent (W valid + 2 junk cols / row)
    Lf = Hp * Wp + 2      # flat padded-input length so the last tap window stays in bounds
    HIGH = jax.lax.Precision.HIGHEST

    # ---- glue (plain JAX): spatial pad + flatten, weight / BN folding --------
    x_pad = jnp.pad(x.astype(jnp.float32), ((0, 0), (0, 0), (1, 1), (1, 1)))
    x_flat = jnp.pad(x_pad.reshape(B, C, Hp * Wp),
                     ((0, 0), (0, 0), (0, Lf - Hp * Wp)))            # (B, C, Lf)

    # Combined per-tap weight blocks:
    #   w_taps[t, m*C + co, ci] = branch-m weight for tap t, where tap t has
    #   offset (dy, dx) = (t//3, t%3) into the universally 1-padded input.
    # Rows are zero where a branch does not use the tap.
    w_taps = jnp.zeros((9, M * C, C), jnp.float32)
    for kx in range(3):                       # branch 0: 1x3, pad (0,1) -> taps (1, kx)
        w_taps = w_taps.at[3 + kx, 0:C, :].set(P["w1"][:, :, 0, kx])
    for ky in range(3):                       # branch 1: 3x3, pad (1,1) -> taps (ky, kx)
        for kx in range(3):
            w_taps = w_taps.at[3 * ky + kx, C:2 * C, :].set(P["w2"][:, :, ky, kx])
    for ky in range(3):                       # branch 2: 3x1, pad (1,0) -> taps (ky, 1)
        w_taps = w_taps.at[3 * ky + 1, 2 * C:3 * C, :].set(P["w3"][:, :, ky, 0])

    # fold conv bias + BatchNorm (inference stats) into per-channel scale/shift
    conv_b = jnp.stack([P["b1"], P["b2"], P["b3"]], axis=0)           # (M, C)
    scale_mc = P["bn_gamma"] / jnp.sqrt(P["bn_var"] + EPS)            # (M, C)
    shift_mc = (conv_b - P["bn_mean"]) * scale_mc + P["bn_beta"]      # (M, C)
    bn_scale = scale_mc.reshape(M * C, 1)
    bn_shift = shift_mc.reshape(M * C, 1)

    # additive mask: 0 on valid columns (x < W), -1e30 on the 2 junk cols per row
    neg_mask = jnp.where((jnp.arange(Q) % Wp) < W, 0.0, NEG_INF)
    neg_mask = neg_mask.astype(jnp.float32).reshape(1, Q)

    wmask_c = P["wmask"].reshape(C, 1)
    bmask_11 = P["bmask"].reshape(1, 1)
    wfc_cd = P["wfc"].T                                               # (C, d)
    bfc_r = P["bfc"].reshape(1, d)
    lng_r = P["ln_g"].reshape(1, d)
    lnb_r = P["ln_b"].reshape(1, d)
    wfcs = P["wfcs"]                                                  # (M, C, d)
    bfcs = P["bfcs"].reshape(M, C, 1)

    # ---- fused kernel: convs + BN + ReLU + context pool + fc/LN + mix --------
    def sk_kernel(x_ref, wt_ref, scale_ref, shift_ref, nmask_ref, wmask_ref,
                  bmask_ref, wfc_ref, bfc_ref, lng_ref, lnb_ref, wfcs_ref,
                  bfcs_ref, out_ref):
        xf = x_ref[0]                                       # (C, Lf)

        # 9 per-tap MXU matmuls: (3C, C) @ (C, Q) accumulated in f32.
        acc = jnp.dot(wt_ref[0], xf[:, 0:Q],
                      precision=HIGH, preferred_element_type=jnp.float32)
        for t in range(1, 9):
            dy, dx = t // 3, t % 3
            s = dy * Wp + dx
            acc = acc + jnp.dot(wt_ref[t], xf[:, s:s + Q],
                                precision=HIGH,
                                preferred_element_type=jnp.float32)
        feas = jnp.maximum(acc * scale_ref[...] + shift_ref[...], 0.0)  # (3C, Q)

        f0 = feas[0:C, :]
        f1 = feas[C:2 * C, :]
        f2 = feas[2 * C:3 * C, :]
        U = f0 + f1 + f2                                    # (C, Q)  (fea_U, VMEM-resident)

        # ContextBlock 'att' pool: 1x1-conv mask -> softmax over valid spatial
        logits = jnp.sum(U * wmask_ref[...], axis=0, keepdims=True) \
            + bmask_ref[...] + nmask_ref[...]               # (1, Q), junk cols at -1e30
        lmax = jnp.max(logits, axis=1, keepdims=True)
        p = jnp.exp(logits - lmax)                          # junk cols underflow to 0
        p = p / jnp.sum(p, axis=1, keepdims=True)
        ctx = jnp.sum(U * p, axis=1, keepdims=True)         # (C, 1)

        # fc: 1x1 conv C->d + LayerNorm over d + ReLU (contract C on sublanes)
        z = jnp.sum(wfc_ref[...] * ctx, axis=0, keepdims=True) + bfc_ref[...]  # (1, d)
        mu = jnp.mean(z, axis=1, keepdims=True)
        var = jnp.mean((z - mu) ** 2, axis=1, keepdims=True)
        z = (z - mu) / jnp.sqrt(var + EPS)
        z = jnp.maximum(z * lng_ref[...] + lnb_ref[...], 0.0)                  # (1, d)

        # M linear heads d->C + softmax over the branch axis (contract d on lanes)
        lg = [jnp.sum(wfcs_ref[m] * z, axis=1, keepdims=True) + bfcs_ref[m]
              for m in range(M)]                            # (C, 1) each
        amax = jnp.maximum(jnp.maximum(lg[0], lg[1]), lg[2])
        ex = [jnp.exp(l - amax) for l in lg]
        inv = 1.0 / (ex[0] + ex[1] + ex[2])
        a0, a1, a2 = ex[0] * inv, ex[1] * inv, ex[2] * inv  # hoisted (C,1) branch weights

        # attention-weighted branch sum; lane-dense (Q-wide) output store
        out_ref[0] = f0 * a0 + f1 * a1 + f2 * a2            # (C, Q)

    out_flat = pl.pallas_call(
        sk_kernel,
        out_shape=jax.ShapeDtypeStruct((B, C, Q), jnp.float32),
        grid_spec=pltpu.PrefetchScalarGridSpec(
            num_scalar_prefetch=0,
            grid=(B,),
            in_specs=[
                pl.BlockSpec((1, C, Lf), lambda b: (b, 0, 0)),
                pl.BlockSpec((9, M * C, C), lambda b: (0, 0, 0)),
                pl.BlockSpec((M * C, 1), lambda b: (0, 0)),
                pl.BlockSpec((M * C, 1), lambda b: (0, 0)),
                pl.BlockSpec((1, Q), lambda b: (0, 0)),
                pl.BlockSpec((C, 1), lambda b: (0, 0)),
                pl.BlockSpec((1, 1), lambda b: (0, 0)),
                pl.BlockSpec((C, d), lambda b: (0, 0)),
                pl.BlockSpec((1, d), lambda b: (0, 0)),
                pl.BlockSpec((1, d), lambda b: (0, 0)),
                pl.BlockSpec((1, d), lambda b: (0, 0)),
                pl.BlockSpec((M, C, d), lambda b: (0, 0, 0)),
                pl.BlockSpec((M, C, 1), lambda b: (0, 0, 0)),
            ],
            out_specs=pl.BlockSpec((1, C, Q), lambda b: (b, 0, 0)),
        ),
        compiler_params=pltpu.CompilerParams(
            dimension_semantics=("parallel",)),
    )(x_flat, w_taps, bn_scale, bn_shift, neg_mask, wmask_c, bmask_11,
      wfc_cd, bfc_r, lng_r, lnb_r, wfcs, bfcs)

    # drop the 2 junk columns per row, restore (B, C, H, W), then crop
    out = out_flat.reshape(B, C, H, Wp)[:, :, :, :W]
    if crop:
        out = out[:, :, 1:-1, 1:-1]
    return out


# ---- pure-JAX reference (for correctness check) ------------------------------
def reference_forward(x, P, crop=True):
    B, C, H, W = x.shape
    M = M_BRANCHES

    def branch(m, w, b, pad):
        y = jax.lax.conv_general_dilated(
            x, w, window_strides=(1, 1),
            padding=((pad[0], pad[0]), (pad[1], pad[1])),
            dimension_numbers=("NCHW", "OIHW", "NCHW"),
            precision=jax.lax.Precision.HIGHEST)
        y = y + b[None, :, None, None]
        y = (y - P["bn_mean"][m][None, :, None, None]) / \
            jnp.sqrt(P["bn_var"][m][None, :, None, None] + EPS)
        y = y * P["bn_gamma"][m][None, :, None, None] + P["bn_beta"][m][None, :, None, None]
        return jnp.maximum(y, 0.0)

    feas = jnp.stack([
        branch(0, P["w1"], P["b1"], (0, 1)),
        branch(1, P["w2"], P["b2"], (1, 1)),
        branch(2, P["w3"], P["b3"], (1, 0)),
    ], axis=1)                                                        # (B, M, C, H, W)
    fea_U = feas.sum(axis=1)                                          # (B, C, H, W)

    logits = jnp.einsum("bchw,c->bhw", fea_U, P["wmask"]) + P["bmask"][0]
    mask = jax.nn.softmax(logits.reshape(B, H * W), axis=1).reshape(B, H, W)
    ctx = jnp.einsum("bchw,bhw->bc", fea_U, mask)                     # (B, C)

    z = ctx @ P["wfc"].T + P["bfc"]                                   # (B, d)
    mu = z.mean(axis=1, keepdims=True)
    var = ((z - mu) ** 2).mean(axis=1, keepdims=True)
    z = (z - mu) / jnp.sqrt(var + EPS)
    z = jnp.maximum(z * P["ln_g"] + P["ln_b"], 0.0)

    att = jnp.stack([z @ P["wfcs"][m].T + P["bfcs"][m] for m in range(M)], axis=1)
    att = jax.nn.softmax(att, axis=1)                                 # (B, M, C)
    fea_v = (feas * att[:, :, :, None, None]).sum(axis=1)             # (B, C, H, W)
    if crop:
        fea_v = fea_v[:, :, 1:-1, 1:-1]
    return fea_v


if __name__ == "__main__":
    key = jax.random.PRNGKey(0)
    B, C, H, W = 2, 4, 16, 16
    r, L = 8, 32
    d = max(int(C / r), L)  # = 32

    kx, kp = jax.random.split(key)
    x = jax.random.normal(kx, (B, C, H, W), jnp.float32)
    P = make_params(kp, C, d)

    out = skconv2_pallas(x, P, crop=True)
    out = jax.block_until_ready(out)
    assert out.shape == (B, C, H - 2, W - 2), out.shape

    ref = reference_forward(x, P, crop=True)
    max_err = float(jnp.max(jnp.abs(out - ref)))
    if not bool(jnp.allclose(out, ref, rtol=1e-3, atol=1e-3)):
        raise AssertionError(f"Pallas output mismatch vs reference, max abs err={max_err}")
    print("KERNEL_OK")
</pallas_src>

<mosaic_0001>
module attributes {stable_mosaic.version = 11 : i64} {
  func.func @sk_kernel(%arg0: i32, %arg1: memref<1x4x326xf32, #tpu.memory_space<vmem>>, %arg2: memref<9x12x4xf32, #tpu.memory_space<vmem>>, %arg3: memref<12x1xf32, #tpu.memory_space<vmem>>, %arg4: memref<12x1xf32, #tpu.memory_space<vmem>>, %arg5: memref<1x288xf32, #tpu.memory_space<vmem>>, %arg6: memref<4x1xf32, #tpu.memory_space<vmem>>, %arg7: memref<1x1xf32, #tpu.memory_space<vmem>>, %arg8: memref<4x32xf32, #tpu.memory_space<vmem>>, %arg9: memref<1x32xf32, #tpu.memory_space<vmem>>, %arg10: memref<1x32xf32, #tpu.memory_space<vmem>>, %arg11: memref<1x32xf32, #tpu.memory_space<vmem>>, %arg12: memref<3x4x32xf32, #tpu.memory_space<vmem>>, %arg13: memref<3x4x1xf32, #tpu.memory_space<vmem>>, %arg14: memref<1x4x288xf32, #tpu.memory_space<vmem>>) attributes {dimension_semantics = [#tpu.dimension_semantics<parallel>], iteration_bounds = array<i64: 2>, scalar_prefetch = 0 : i64, scratch_operands = 0 : i64, tpu.core_type = #tpu.core_type<tc>, window_params = [{transform_indices = @transform_0, window_bounds = array<i64: 1, 4, 326>}, {pipeline_mode = #tpu.pipeline_mode<synchronous>, transform_indices = @transform_1, window_bounds = array<i64: 9, 12, 4>}, {pipeline_mode = #tpu.pipeline_mode<synchronous>, transform_indices = @transform_2, window_bounds = array<i64: 12, 1>}, {pipeline_mode = #tpu.pipeline_mode<synchronous>, transform_indices = @transform_3, window_bounds = array<i64: 12, 1>}, {pipeline_mode = #tpu.pipeline_mode<synchronous>, transform_indices = @transform_4, window_bounds = array<i64: 1, 288>}, {pipeline_mode = #tpu.pipeline_mode<synchronous>, transform_indices = @transform_5, window_bounds = array<i64: 4, 1>}, {pipeline_mode = #tpu.pipeline_mode<synchronous>, transform_indices = @transform_6, window_bounds = array<i64: 1, 1>}, {pipeline_mode = #tpu.pipeline_mode<synchronous>, transform_indices = @transform_7, window_bounds = array<i64: 4, 32>}, {pipeline_mode = #tpu.pipeline_mode<synchronous>, transform_indices = @transform_8, window_bounds = array<i64: 1, 32>}, {pipeline_mode = #tpu.pipeline_mode<synchronous>, transform_indices = @transform_9, window_bounds = array<i64: 1, 32>}, {pipeline_mode = #tpu.pipeline_mode<synchronous>, transform_indices = @transform_10, window_bounds = array<i64: 1, 32>}, {pipeline_mode = #tpu.pipeline_mode<synchronous>, transform_indices = @transform_11, window_bounds = array<i64: 3, 4, 32>}, {pipeline_mode = #tpu.pipeline_mode<synchronous>, transform_indices = @transform_12, window_bounds = array<i64: 3, 4, 1>}, {transform_indices = @transform_13, window_bounds = array<i64: 1, 4, 288>}]} {
    %c0 = arith.constant 0 : index
    %c0_0 = arith.constant 0 : index
    %c0_1 = arith.constant 0 : index
    %0 = vector.load %arg1[%c0, %c0_0, %c0_1] : memref<1x4x326xf32, #tpu.memory_space<vmem>>, vector<1x4x326xf32>
    %1 = vector.shape_cast %0 : vector<1x4x326xf32> to vector<4x326xf32>
    %c0_2 = arith.constant 0 : index
    %c0_3 = arith.constant 0 : index
    %c0_4 = arith.constant 0 : index
    %2 = vector.load %arg2[%c0_2, %c0_3, %c0_4] : memref<9x12x4xf32, #tpu.memory_space<vmem>>, vector<1x12x4xf32>
    %3 = vector.shape_cast %2 : vector<1x12x4xf32> to vector<12x4xf32>
    %4 = vector.extract_strided_slice %1 {offsets = [0, 0], sizes = [4, 288], strides = [1, 1]} : vector<4x326xf32> to vector<4x288xf32>
    %cst = arith.constant dense<0.000000e+00> : vector<12x288xf32>
    %5 = tpu.matmul %3, %4, %cst {dimension_numbers = #tpu.dot_dimension_numbers<[1], [0], [0], [1], [0, 0, 1, 1], [], []>, precision = #tpu.contract_precision<fp32>} : vector<12x4xf32>, vector<4x288xf32>, vector<12x288xf32> -> vector<12x288xf32>
    %c1 = arith.constant 1 : index
    %c0_5 = arith.constant 0 : index
    %c0_6 = arith.constant 0 : index
    %6 = vector.load %arg2[%c1, %c0_5, %c0_6] : memref<9x12x4xf32, #tpu.memory_space<vmem>>, vector<1x12x4xf32>
    %7 = vector.shape_cast %6 : vector<1x12x4xf32> to vector<12x4xf32>
    %8 = vector.extract_strided_slice %1 {offsets = [0, 1], sizes = [4, 288], strides = [1, 1]} : vector<4x326xf32> to vector<4x288xf32>
    %cst_7 = arith.constant dense<0.000000e+00> : vector<12x288xf32>
    %9 = tpu.matmul %7, %8, %cst_7 {dimension_numbers = #tpu.dot_dimension_numbers<[1], [0], [0], [1], [0, 0, 1, 1], [], []>, precision = #tpu.contract_precision<fp32>} : vector<12x4xf32>, vector<4x288xf32>, vector<12x288xf32> -> vector<12x288xf32>
    %10 = arith.addf %5, %9 : vector<12x288xf32>
    %c2 = arith.constant 2 : index
    %c0_8 = arith.constant 0 : index
    %c0_9 = arith.constant 0 : index
    %11 = vector.load %arg2[%c2, %c0_8, %c0_9] : memref<9x12x4xf32, #tpu.memory_space<vmem>>, vector<1x12x4xf32>
    %12 = vector.shape_cast %11 : vector<1x12x4xf32> to vector<12x4xf32>
    %13 = vector.extract_strided_slice %1 {offsets = [0, 2], sizes = [4, 288], strides = [1, 1]} : vector<4x326xf32> to vector<4x288xf32>
    %cst_10 = arith.constant dense<0.000000e+00> : vector<12x288xf32>
    %14 = tpu.matmul %12, %13, %cst_10 {dimension_numbers = #tpu.dot_dimension_numbers<[1], [0], [0], [1], [0, 0, 1, 1], [], []>, precision = #tpu.contract_precision<fp32>} : vector<12x4xf32>, vector<4x288xf32>, vector<12x288xf32> -> vector<12x288xf32>
    %15 = arith.addf %10, %14 : vector<12x288xf32>
    %c3 = arith.constant 3 : index
    %c0_11 = arith.constant 0 : index
    %c0_12 = arith.constant 0 : index
    %16 = vector.load %arg2[%c3, %c0_11, %c0_12] : memref<9x12x4xf32, #tpu.memory_space<vmem>>, vector<1x12x4xf32>
    %17 = vector.shape_cast %16 : vector<1x12x4xf32> to vector<12x4xf32>
    %18 = vector.extract_strided_slice %1 {offsets = [0, 18], sizes = [4, 288], strides = [1, 1]} : vector<4x326xf32> to vector<4x288xf32>
    %cst_13 = arith.constant dense<0.000000e+00> : vector<12x288xf32>
    %19 = tpu.matmul %17, %18, %cst_13 {dimension_numbers = #tpu.dot_dimension_numbers<[1], [0], [0], [1], [0, 0, 1, 1], [], []>, precision = #tpu.contract_precision<fp32>} : vector<12x4xf32>, vector<4x288xf32>, vector<12x288xf32> -> vector<12x288xf32>
    %20 = arith.addf %15, %19 : vector<12x288xf32>
    %c4 = arith.constant 4 : index
    %c0_14 = arith.constant 0 : index
    %c0_15 = arith.constant 0 : index
    %21 = vector.load %arg2[%c4, %c0_14, %c0_15] : memref<9x12x4xf32, #tpu.memory_space<vmem>>, vector<1x12x4xf32>
    %22 = vector.shape_cast %21 : vector<1x12x4xf32> to vector<12x4xf32>
    %23 = vector.extract_strided_slice %1 {offsets = [0, 19], sizes = [4, 288], strides = [1, 1]} : vector<4x326xf32> to vector<4x288xf32>
    %cst_16 = arith.constant dense<0.000000e+00> : vector<12x288xf32>
    %24 = tpu.matmul %22, %23, %cst_16 {dimension_numbers = #tpu.dot_dimension_numbers<[1], [0], [0], [1], [0, 0, 1, 1], [], []>, precision = #tpu.contract_precision<fp32>} : vector<12x4xf32>, vector<4x288xf32>, vector<12x288xf32> -> vector<12x288xf32>
    %25 = arith.addf %20, %24 : vector<12x288xf32>
    %c5 = arith.constant 5 : index
    %c0_17 = arith.constant 0 : index
    %c0_18 = arith.constant 0 : index
    %26 = vector.load %arg2[%c5, %c0_17, %c0_18] : memref<9x12x4xf32, #tpu.memory_space<vmem>>, vector<1x12x4xf32>
    %27 = vector.shape_cast %26 : vector<1x12x4xf32> to vector<12x4xf32>
    %28 = vector.extract_strided_slice %1 {offsets = [0, 20], sizes = [4, 288], strides = [1, 1]} : vector<4x326xf32> to vector<4x288xf32>
    %cst_19 = arith.constant dense<0.000000e+00> : vector<12x288xf32>
    %29 = tpu.matmul %27, %28, %cst_19 {dimension_numbers = #tpu.dot_dimension_numbers<[1], [0], [0], [1], [0, 0, 1, 1], [], []>, precision = #tpu.contract_precision<fp32>} : vector<12x4xf32>, vector<4x288xf32>, vector<12x288xf32> -> vector<12x288xf32>
    %30 = arith.addf %25, %29 : vector<12x288xf32>
    %c6 = arith.constant 6 : index
    %c0_20 = arith.constant 0 : index
    %c0_21 = arith.constant 0 : index
    %31 = vector.load %arg2[%c6, %c0_20, %c0_21] : memref<9x12x4xf32, #tpu.memory_space<vmem>>, vector<1x12x4xf32>
    %32 = vector.shape_cast %31 : vector<1x12x4xf32> to vector<12x4xf32>
    %33 = vector.extract_strided_slice %1 {offsets = [0, 36], sizes = [4, 288], strides = [1, 1]} : vector<4x326xf32> to vector<4x288xf32>
    %cst_22 = arith.constant dense<0.000000e+00> : vector<12x288xf32>
    %34 = tpu.matmul %32, %33, %cst_22 {dimension_numbers = #tpu.dot_dimension_numbers<[1], [0], [0], [1], [0, 0, 1, 1], [], []>, precision = #tpu.contract_precision<fp32>} : vector<12x4xf32>, vector<4x288xf32>, vector<12x288xf32> -> vector<12x288xf32>
    %35 = arith.addf %30, %34 : vector<12x288xf32>
    %c7 = arith.constant 7 : index
    %c0_23 = arith.constant 0 : index
    %c0_24 = arith.constant 0 : index
    %36 = vector.load %arg2[%c7, %c0_23, %c0_24] : memref<9x12x4xf32, #tpu.memory_space<vmem>>, vector<1x12x4xf32>
    %37 = vector.shape_cast %36 : vector<1x12x4xf32> to vector<12x4xf32>
    %38 = vector.extract_strided_slice %1 {offsets = [0, 37], sizes = [4, 288], strides = [1, 1]} : vector<4x326xf32> to vector<4x288xf32>
    %cst_25 = arith.constant dense<0.000000e+00> : vector<12x288xf32>
    %39 = tpu.matmul %37, %38, %cst_25 {dimension_numbers = #tpu.dot_dimension_numbers<[1], [0], [0], [1], [0, 0, 1, 1], [], []>, precision = #tpu.contract_precision<fp32>} : vector<12x4xf32>, vector<4x288xf32>, vector<12x288xf32> -> vector<12x288xf32>
    %40 = arith.addf %35, %39 : vector<12x288xf32>
    %c8 = arith.constant 8 : index
    %c0_26 = arith.constant 0 : index
    %c0_27 = arith.constant 0 : index
    %41 = vector.load %arg2[%c8, %c0_26, %c0_27] : memref<9x12x4xf32, #tpu.memory_space<vmem>>, vector<1x12x4xf32>
    %42 = vector.shape_cast %41 : vector<1x12x4xf32> to vector<12x4xf32>
    %43 = vector.extract_strided_slice %1 {offsets = [0, 38], sizes = [4, 288], strides = [1, 1]} : vector<4x326xf32> to vector<4x288xf32>
    %cst_28 = arith.constant dense<0.000000e+00> : vector<12x288xf32>
    %44 = tpu.matmul %42, %43, %cst_28 {dimension_numbers = #tpu.dot_dimension_numbers<[1], [0], [0], [1], [0, 0, 1, 1], [], []>, precision = #tpu.contract_precision<fp32>} : vector<12x4xf32>, vector<4x288xf32>, vector<12x288xf32> -> vector<12x288xf32>
    %45 = arith.addf %40, %44 : vector<12x288xf32>
    %c0_29 = arith.constant 0 : index
    %c0_30 = arith.constant 0 : index
    %46 = vector.load %arg3[%c0_29, %c0_30] : memref<12x1xf32, #tpu.memory_space<vmem>>, vector<12x1xf32>
    %47 = vector.broadcast %46 : vector<12x1xf32> to vector<12x288xf32>
    %48 = arith.mulf %45, %47 : vector<12x288xf32>
    %c0_31 = arith.constant 0 : index
    %c0_32 = arith.constant 0 : index
    %49 = vector.load %arg4[%c0_31, %c0_32] : memref<12x1xf32, #tpu.memory_space<vmem>>, vector<12x1xf32>
    %50 = vector.broadcast %49 : vector<12x1xf32> to vector<12x288xf32>
    %51 = arith.addf %48, %50 : vector<12x288xf32>
    %cst_33 = arith.constant 0.000000e+00 : f32
    %52 = vector.broadcast %cst_33 : f32 to vector<12x288xf32>
    %53 = arith.maximumf %51, %52 : vector<12x288xf32>
    %54 = vector.extract_strided_slice %53 {offsets = [0, 0], sizes = [4, 288], strides = [1, 1]} : vector<12x288xf32> to vector<4x288xf32>
    %55 = vector.extract_strided_slice %53 {offsets = [4, 0], sizes = [4, 288], strides = [1, 1]} : vector<12x288xf32> to vector<4x288xf32>
    %56 = vector.extract_strided_slice %53 {offsets = [8, 0], sizes = [4, 288], strides = [1, 1]} : vector<12x288xf32> to vector<4x288xf32>
    %57 = arith.addf %54, %55 : vector<4x288xf32>
    %58 = arith.addf %57, %56 : vector<4x288xf32>
    %c0_34 = arith.constant 0 : index
    %c0_35 = arith.constant 0 : index
    %59 = vector.load %arg6[%c0_34, %c0_35] : memref<4x1xf32, #tpu.memory_space<vmem>>, vector<4x1xf32>
    %60 = vector.broadcast %59 : vector<4x1xf32> to vector<4x288xf32>
    %61 = arith.mulf %58, %60 : vector<4x288xf32>
    %cst_36 = arith.constant dense<0.000000e+00> : vector<288xf32>
    %62 = vector.multi_reduction <add>, %61, %cst_36 [0] : vector<4x288xf32> to vector<288xf32>
    %63 = vector.shape_cast %62 : vector<288xf32> to vector<1x288xf32>
    %c0_37 = arith.constant 0 : index
    %c0_38 = arith.constant 0 : index
    %64 = vector.load %arg7[%c0_37, %c0_38] : memref<1x1xf32, #tpu.memory_space<vmem>>, vector<1x1xf32>
    %65 = vector.broadcast %64 : vector<1x1xf32> to vector<1x288xf32>
    %66 = arith.addf %63, %65 : vector<1x288xf32>
    %c0_39 = arith.constant 0 : index
    %c0_40 = arith.constant 0 : index
    %67 = vector.load %arg5[%c0_39, %c0_40] : memref<1x288xf32, #tpu.memory_space<vmem>>, vector<1x288xf32>
    %68 = arith.addf %66, %67 : vector<1x288xf32>
    %cst_41 = arith.constant dense<0xFF800000> : vector<1xf32>
    %69 = vector.multi_reduction <maximumf>, %68, %cst_41 [1] : vector<1x288xf32> to vector<1xf32>
    %70 = vector.shape_cast %69 : vector<1xf32> to vector<1x1xf32>
    %71 = vector.broadcast %70 : vector<1x1xf32> to vector<1x288xf32>
    %72 = arith.subf %68, %71 : vector<1x288xf32>
    %73 = math.exp %72 : vector<1x288xf32>
    %cst_42 = arith.constant dense<0.000000e+00> : vector<1xf32>
    %74 = vector.multi_reduction <add>, %73, %cst_42 [1] : vector<1x288xf32> to vector<1xf32>
    %75 = vector.shape_cast %74 : vector<1xf32> to vector<1x1xf32>
    %76 = vector.broadcast %75 : vector<1x1xf32> to vector<1x288xf32>
    %77 = arith.divf %73, %76 : vector<1x288xf32>
    %78 = vector.broadcast %77 : vector<1x288xf32> to vector<4x288xf32>
    %79 = arith.mulf %58, %78 : vector<4x288xf32>
    %cst_43 = arith.constant dense<0.000000e+00> : vector<4xf32>
    %80 = vector.multi_reduction <add>, %79, %cst_43 [1] : vector<4x288xf32> to vector<4xf32>
    %81 = vector.shape_cast %80 : vector<4xf32> to vector<4x1xf32>
    %c0_44 = arith.constant 0 : index
    %c0_45 = arith.constant 0 : index
    %82 = vector.load %arg8[%c0_44, %c0_45] : memref<4x32xf32, #tpu.memory_space<vmem>>, vector<4x32xf32>
    %83 = vector.broadcast %81 : vector<4x1xf32> to vector<4x32xf32>
    %84 = arith.mulf %82, %83 : vector<4x32xf32>
    %cst_46 = arith.constant dense<0.000000e+00> : vector<32xf32>
    %85 = vector.multi_reduction <add>, %84, %cst_46 [0] : vector<4x32xf32> to vector<32xf32>
    %86 = vector.shape_cast %85 : vector<32xf32> to vector<1x32xf32>
    %c0_47 = arith.constant 0 : index
    %c0_48 = arith.constant 0 : index
    %87 = vector.load %arg9[%c0_47, %c0_48] : memref<1x32xf32, #tpu.memory_space<vmem>>, vector<1x32xf32>
    %88 = arith.addf %86, %87 : vector<1x32xf32>
    %cst_49 = arith.constant dense<0.000000e+00> : vector<1xf32>
    %89 = vector.multi_reduction <add>, %88, %cst_49 [1] : vector<1x32xf32> to vector<1xf32>
    %90 = vector.shape_cast %89 : vector<1xf32> to vector<1x1xf32>
    %cst_50 = arith.constant 3.200000e+01 : f32
    %91 = vector.broadcast %cst_50 : f32 to vector<1x1xf32>
    %92 = arith.divf %90, %91 : vector<1x1xf32>
    %93 = vector.broadcast %92 : vector<1x1xf32> to vector<1x32xf32>
    %94 = arith.subf %88, %93 : vector<1x32xf32>
    %95 = arith.mulf %94, %94 : vector<1x32xf32>
    %cst_51 = arith.constant dense<0.000000e+00> : vector<1xf32>
    %96 = vector.multi_reduction <add>, %95, %cst_51 [1] : vector<1x32xf32> to vector<1xf32>
    %97 = vector.shape_cast %96 : vector<1xf32> to vector<1x1xf32>
    %cst_52 = arith.constant 3.200000e+01 : f32
    %98 = vector.broadcast %cst_52 : f32 to vector<1x1xf32>
    %99 = arith.divf %97, %98 : vector<1x1xf32>
    %100 = vector.broadcast %92 : vector<1x1xf32> to vector<1x32xf32>
    %101 = arith.subf %88, %100 : vector<1x32xf32>
    %cst_53 = arith.constant 9.99999974E-6 : f32
    %102 = vector.broadcast %cst_53 : f32 to vector<1x1xf32>
    %103 = arith.addf %99, %102 : vector<1x1xf32>
    %104 = math.sqrt %103 : vector<1x1xf32>
    %105 = vector.broadcast %104 : vector<1x1xf32> to vector<1x32xf32>
    %106 = arith.divf %101, %105 : vector<1x32xf32>
    %c0_54 = arith.constant 0 : index
    %c0_55 = arith.constant 0 : index
    %107 = vector.load %arg10[%c0_54, %c0_55] : memref<1x32xf32, #tpu.memory_space<vmem>>, vector<1x32xf32>
    %108 = arith.mulf %106, %107 : vector<1x32xf32>
    %c0_56 = arith.constant 0 : index
    %c0_57 = arith.constant 0 : index
    %109 = vector.load %arg11[%c0_56, %c0_57] : memref<1x32xf32, #tpu.memory_space<vmem>>, vector<1x32xf32>
    %110 = arith.addf %108, %109 : vector<1x32xf32>
    %cst_58 = arith.constant 0.000000e+00 : f32
    %111 = vector.broadcast %cst_58 : f32 to vector<1x32xf32>
    %112 = arith.maximumf %110, %111 : vector<1x32xf32>
    %c0_59 = arith.constant 0 : index
    %c0_60 = arith.constant 0 : index
    %c0_61 = arith.constant 0 : index
    %113 = vector.load %arg12[%c0_59, %c0_60, %c0_61] : memref<3x4x32xf32, #tpu.memory_space<vmem>>, vector<1x4x32xf32>
    %114 = vector.shape_cast %113 : vector<1x4x32xf32> to vector<4x32xf32>
    %115 = vector.broadcast %112 : vector<1x32xf32> to vector<4x32xf32>
    %116 = arith.mulf %114, %115 : vector<4x32xf32>
    %cst_62 = arith.constant dense<0.000000e+00> : vector<4xf32>
    %117 = vector.multi_reduction <add>, %116, %cst_62 [1] : vector<4x32xf32> to vector<4xf32>
    %118 = vector.shape_cast %117 : vector<4xf32> to vector<4x1xf32>
    %c0_63 = arith.constant 0 : index
    %c0_64 = arith.constant 0 : index
    %c0_65 = arith.constant 0 : index
    %119 = vector.load %arg13[%c0_63, %c0_64, %c0_65] : memref<3x4x1xf32, #tpu.memory_space<vmem>>, vector<1x4x1xf32>
    %120 = vector.shape_cast %119 : vector<1x4x1xf32> to vector<4x1xf32>
    %121 = arith.addf %118, %120 : vector<4x1xf32>
    %c1_66 = arith.constant 1 : index
    %c0_67 = arith.constant 0 : index
    %c0_68 = arith.constant 0 : index
    %122 = vector.load %arg12[%c1_66, %c0_67, %c0_68] : memref<3x4x32xf32, #tpu.memory_space<vmem>>, vector<1x4x32xf32>
    %123 = vector.shape_cast %122 : vector<1x4x32xf32> to vector<4x32xf32>
    %124 = vector.broadcast %112 : vector<1x32xf32> to vector<4x32xf32>
    %125 = arith.mulf %123, %124 : vector<4x32xf32>
    %cst_69 = arith.constant dense<0.000000e+00> : vector<4xf32>
    %126 = vector.multi_reduction <add>, %125, %cst_69 [1] : vector<4x32xf32> to vector<4xf32>
    %127 = vector.shape_cast %126 : vector<4xf32> to vector<4x1xf32>
    %c1_70 = arith.constant 1 : index
    %c0_71 = arith.constant 0 : index
    %c0_72 = arith.constant 0 : index
    %128 = vector.load %arg13[%c1_70, %c0_71, %c0_72] : memref<3x4x1xf32, #tpu.memory_space<vmem>>, vector<1x4x1xf32>
    %129 = vector.shape_cast %128 : vector<1x4x1xf32> to vector<4x1xf32>
    %130 = arith.addf %127, %129 : vector<4x1xf32>
    %c2_73 = arith.constant 2 : index
    %c0_74 = arith.constant 0 : index
    %c0_75 = arith.constant 0 : index
    %131 = vector.load %arg12[%c2_73, %c0_74, %c0_75] : memref<3x4x32xf32, #tpu.memory_space<vmem>>, vector<1x4x32xf32>
    %132 = vector.shape_cast %131 : vector<1x4x32xf32> to vector<4x32xf32>
    %133 = vector.broadcast %112 : vector<1x32xf32> to vector<4x32xf32>
    %134 = arith.mulf %132, %133 : vector<4x32xf32>
    %cst_76 = arith.constant dense<0.000000e+00> : vector<4xf32>
    %135 = vector.multi_reduction <add>, %134, %cst_76 [1] : vector<4x32xf32> to vector<4xf32>
    %136 = vector.shape_cast %135 : vector<4xf32> to vector<4x1xf32>
    %c2_77 = arith.constant 2 : index
    %c0_78 = arith.constant 0 : index
    %c0_79 = arith.constant 0 : index
    %137 = vector.load %arg13[%c2_77, %c0_78, %c0_79] : memref<3x4x1xf32, #tpu.memory_space<vmem>>, vector<1x4x1xf32>
    %138 = vector.shape_cast %137 : vector<1x4x1xf32> to vector<4x1xf32>
    %139 = arith.addf %136, %138 : vector<4x1xf32>
    %140 = arith.maximumf %121, %130 : vector<4x1xf32>
    %141 = arith.maximumf %140, %139 : vector<4x1xf32>
    %142 = arith.subf %121, %141 : vector<4x1xf32>
    %143 = math.exp %142 : vector<4x1xf32>
    %144 = arith.subf %130, %141 : vector<4x1xf32>
    %145 = math.exp %144 : vector<4x1xf32>
    %146 = arith.subf %139, %141 : vector<4x1xf32>
    %147 = math.exp %146 : vector<4x1xf32>
    %148 = arith.addf %143, %145 : vector<4x1xf32>
    %149 = arith.addf %148, %147 : vector<4x1xf32>
    %cst_80 = arith.constant 1.000000e+00 : f32
    %150 = vector.broadcast %cst_80 : f32 to vector<4x1xf32>
    %151 = arith.divf %150, %149 : vector<4x1xf32>
    %152 = arith.mulf %143, %151 : vector<4x1xf32>
    %153 = arith.mulf %145, %151 : vector<4x1xf32>
    %154 = arith.mulf %147, %151 : vector<4x1xf32>
    %155 = vector.broadcast %152 : vector<4x1xf32> to vector<4x288xf32>
    %156 = arith.mulf %54, %155 : vector<4x288xf32>
    %157 = vector.broadcast %153 : vector<4x1xf32> to vector<4x288xf32>
    %158 = arith.mulf %55, %157 : vector<4x288xf32>
    %159 = arith.addf %156, %158 : vector<4x288xf32>
    %160 = vector.broadcast %154 : vector<4x1xf32> to vector<4x288xf32>
    %161 = arith.mulf %56, %160 : vector<4x288xf32>
    %162 = arith.addf %159, %161 : vector<4x288xf32>
    %c0_81 = arith.constant 0 : index
    %c0_82 = arith.constant 0 : index
    %c0_83 = arith.constant 0 : index
    %163 = vector.load %arg14[%c0_81, %c0_82, %c0_83] : memref<1x4x288xf32, #tpu.memory_space<vmem>>, vector<1x4x288xf32>
    %164 = vector.shape_cast %163 : vector<1x4x288xf32> to vector<4x288xf32>
    %165 = vector.shape_cast %162 : vector<4x288xf32> to vector<1x4x288xf32>
    tpu.vector_store %arg14[%c0_81, %c0_82, %c0_83], %165 {strides = array<i32>} : memref<1x4x288xf32, #tpu.memory_space<vmem>>, vector<1x4x288xf32>,
    return
  }
  func.func @transform_0(%arg0: i32) -> (i32, i32, i32) {
    %c0_i32 = arith.constant 0 : i32
    %c0_i32_0 = arith.constant 0 : i32
    %c0_i32_1 = arith.constant 0 : i32
    return %arg0, %c0_i32, %c0_i32_0 : i32, i32, i32
  }
  func.func @transform_1(%arg0: i32) -> (i32, i32, i32) {
    %c0_i32 = arith.constant 0 : i32
    %c0_i32_0 = arith.constant 0 : i32
    %c0_i32_1 = arith.constant 0 : i32
    %c0_i32_2 = arith.constant 0 : i32
    return %c0_i32, %c0_i32_0, %c0_i32_1 : i32, i32, i32
  }
  func.func @transform_2(%arg0: i32) -> (i32, i32) {
    %c0_i32 = arith.constant 0 : i32
    %c0_i32_0 = arith.constant 0 : i32
    %c0_i32_1 = arith.constant 0 : i32
    return %c0_i32, %c0_i32_0 : i32, i32
  }
  func.func @transform_3(%arg0: i32) -> (i32, i32) {
    %c0_i32 = arith.constant 0 : i32
    %c0_i32_0 = arith.constant 0 : i32
    %c0_i32_1 = arith.constant 0 : i32
    return %c0_i32, %c0_i32_0 : i32, i32
  }
  func.func @transform_4(%arg0: i32) -> (i32, i32) {
    %c0_i32 = arith.constant 0 : i32
    %c0_i32_0 = arith.constant 0 : i32
    %c0_i32_1 = arith.constant 0 : i32
    return %c0_i32, %c0_i32_0 : i32, i32
  }
  func.func @transform_5(%arg0: i32) -> (i32, i32) {
    %c0_i32 = arith.constant 0 : i32
    %c0_i32_0 = arith.constant 0 : i32
    %c0_i32_1 = arith.constant 0 : i32
    return %c0_i32, %c0_i32_0 : i32, i32
  }
  func.func @transform_6(%arg0: i32) -> (i32, i32) {
    %c0_i32 = arith.constant 0 : i32
    %c0_i32_0 = arith.constant 0 : i32
    %c0_i32_1 = arith.constant 0 : i32
    return %c0_i32, %c0_i32_0 : i32, i32
  }
  func.func @transform_7(%arg0: i32) -> (i32, i32) {
    %c0_i32 = arith.constant 0 : i32
    %c0_i32_0 = arith.constant 0 : i32
    %c0_i32_1 = arith.constant 0 : i32
    return %c0_i32, %c0_i32_0 : i32, i32
  }
  func.func @transform_8(%arg0: i32) -> (i32, i32) {
    %c0_i32 = arith.constant 0 : i32
    %c0_i32_0 = arith.constant 0 : i32
    %c0_i32_1 = arith.constant 0 : i32
    return %c0_i32, %c0_i32_0 : i32, i32
  }
  func.func @transform_9(%arg0: i32) -> (i32, i32) {
    %c0_i32 = arith.constant 0 : i32
    %c0_i32_0 = arith.constant 0 : i32
    %c0_i32_1 = arith.constant 0 : i32
    return %c0_i32, %c0_i32_0 : i32, i32
  }
  func.func @transform_10(%arg0: i32) -> (i32, i32) {
    %c0_i32 = arith.constant 0 : i32
    %c0_i32_0 = arith.constant 0 : i32
    %c0_i32_1 = arith.constant 0 : i32
    return %c0_i32, %c0_i32_0 : i32, i32
  }
  func.func @transform_11(%arg0: i32) -> (i32, i32, i32) {
    %c0_i32 = arith.constant 0 : i32
    %c0_i32_0 = arith.constant 0 : i32
    %c0_i32_1 = arith.constant 0 : i32
    %c0_i32_2 = arith.constant 0 : i32
    return %c0_i32, %c0_i32_0, %c0_i32_1 : i32, i32, i32
  }
  func.func @transform_12(%arg0: i32) -> (i32, i32, i32) {
    %c0_i32 = arith.constant 0 : i32
    %c0_i32_0 = arith.constant 0 : i32
    %c0_i32_1 = arith.constant 0 : i32
    %c0_i32_2 = arith.constant 0 : i32
    return %c0_i32, %c0_i32_0, %c0_i32_1 : i32, i32, i32
  }
  func.func @transform_13(%arg0: i32) -> (i32, i32, i32) {
    %c0_i32 = arith.constant 0 : i32
    %c0_i32_0 = arith.constant 0 : i32
    %c0_i32_1 = arith.constant 0 : i32
    return %arg0, %c0_i32, %c0_i32_0 : i32, i32, i32
  }
}

</mosaic_0001>

<bundles_post_ra>
// kernel: tpu_custom_call.1
= control target key start
LH: loop header
LB: loop body
LE: loop exit
PB: predicated region body
PF: predicated region fallthrough
CT: control target
= control target key end

     0   :  { %s12410_s0 = inlined_call_operand.vmem [shape: f32[2,4,326], index: 0, kind: input, shape index: {}]   ;;  %s12411_s1 = inlined_call_operand.vmem [shape: f32[9,12,4], index: 1, kind: input, shape index: {}]   ;;  %s12412_s2 = inlined_call_operand.vmem [shape: f32[12,1], index: 2, kind: input, shape index: {}]   ;;  %s12413_s3 = inlined_call_operand.vmem [shape: f32[12,1], index: 3, kind: input, shape index: {}]   ;;  %s12414_s4 = inlined_call_operand.vmem [shape: f32[1,288], index: 4, kind: input, shape index: {}]   ;;  %s12415_s5 = inlined_call_operand.vmem [shape: f32[4,1], index: 5, kind: input, shape index: {}]   ;;  %s12416_s6 = inlined_call_operand.<no memory space> [shape: f32[1,1], index: 6, kind: input, shape index: {}]   ;;  %s12417_s7 = inlined_call_operand.vmem [shape: f32[4,32], index: 7, kind: input, shape index: {}]   ;;  %s12418_s8 = inlined_call_operand.vmem [shape: f32[1,32], index: 8, kind: input, shape index: {}]   ;;  %s12419_s9 = inlined_call_operand.vmem [shape: f32[1,32], index: 9, kind: input, shape index: {}]   ;;  %s12420_s10 = inlined_call_operand.vmem [shape: f32[1,32], index: 10, kind: input, shape index: {}]   ;;  %s12421_s11 = inlined_call_operand.vmem [shape: f32[3,4,32], index: 11, kind: input, shape index: {}]   ;;  %s12422_s12 = inlined_call_operand.vmem [shape: f32[3,4,1], index: 12, kind: input, shape index: {}]   ;;  %s12423_s13 = inlined_call_operand.hbm [shape: f32[2,4,288], index: 13, kind: output, shape index: {}]  }
   0x1   :  { %12424 = sst [smem:[#allocation6_spill]] %s12410_s0  ;;  %v18_v0 = vstv %s12416_s6 }
   0x2   :  { %12425 = sst [smem:[#allocation7_spill]] %s12411_s1  ;;  %19 = vst [vmem:[#allocation2] sm:$0x1] %v18_v0 }
   0x3   :  { %20 = vsyncpa [#allocation4], 0 }
   0x4   :  { %22 = vsyncpa [#allocation4 + $0x1], 0  ;;  %s11102_s27 = smov 0   ;;  %s11104_s28 = smov 0  }
   0x5   :  { %s11106_s29 = smov 0   ;;  %s11108_s30 = smov 0  }
   0x6 LB: > { %s11123_s6 = sadd.s32 4294967295, %s11016_s30   ;;  %s10099_s14 = sadd.s32 4294967294, %s11016_s30   ;;  %s11016_s30 = sphi %s11108_s30, %s12433_s30   ;;  %s11012_s29 = sphi %s11106_s29, %s12432_s29   ;;  %s11008_s28 = sphi %s11104_s28, %s12431_s28   ;;  %s11004_s27 = sphi %s11102_s27, %s12430_s27  }
   0x7   : > { %s11127_s15 = sadd.s32 1, %s11016_s30   ;;  %s313_s16 = sadd.s32 1, %s11012_s29 }
   0x8   : > { %s310_s17 = ssub.s32 %s11016_s30, %s11127_s15  ;;  %p323_p0 = scmp.ne.s32.totalorder %s11012_s29, %s11008_s28 }
   0x9   : > { %p311_p1 = scmp.eq.s32.totalorder %s310_s17, 0  ;;  %p324_p2 = scmp.eq.s32.totalorder %s11123_s6, 1 }
   0xa   : > { %p329_p3 = scmp.ne.s32.totalorder %s11008_s28, %s11004_s27  ;;  %p330_p4 = scmp.eq.s32.totalorder %s10099_s14, 1 }
   0xb   : > { %s11138_s18 = scalar_select %p311_p1, %s11012_s29, %s313_s16  }
   0xc   : > { %p11140_p5 = por %p324_p2, %p323_p0  ;;  %p11144_p6 = por %p330_p4, %p329_p3 }
   0xd   : > { %p10102_p7 = scmp.ge.s32.totalorder %s11016_s30, 1  ;;  %p392_p8 = scmp.lt.s32.totalorder %s11016_s30, 3 }
   0xf   : > { %p393_p9 = pnand %p10102_p7, %p392_p8 }
  0x10   : > { %p436_p10 = scmp.lt.s32.totalorder (!%p393_p9), %s11123_s6, 1  ;;  %s12428_s0 = sld [smem:[#allocation6_spill]] (!%p393_p9)  ;;  %v11018_v1 = vmov (!%p393_p9), 0.0   ;;  %vm460_vm0 = vcmask (!%p393_p9), 31744   ;;  %vm457_vm1 = vcmask (!%p393_p9), 1039360   ;;  %vm467_vm2 = vcmask (!%p393_p9), 1043456  }
  0x11   : > { %396 = sbr.rel (%p393_p9) target bundleno = 2090 (0x82a), region = 72  ;;  %540 = vmatprep.mubr.f32.mxu1 (!%p393_p9), %v11018_v1  ;;  %2679 = vmatprep.mubr.f32.mxu0 (!%p393_p9), %v11018_v1  ;;  %s11019_s26 = smov (!%p393_p9), 127   ;;  %vm2501_vm3 = vcmask (!%p393_p9), 1031168   ;;  %vm3534_vm4 = vcmask (!%p393_p9), 900096   ;;  %vm4567_vm5 = vcmask (!%p393_p9), 891904   ;;  %vm5600_vm6 = vcmask (!%p393_p9), 883712  }
  0x12   : > { %s11020_s14 = smov (!%p393_p9), 126   ;;  %s11021_s16 = smov (!%p393_p9), 110   ;;  %vm6633_vm7 = vcmask (!%p393_p9), 752640   ;;  %vm7666_vm8 = vcmask (!%p393_p9), 744448   ;;  %vm8699_vm9 = vcmask (!%p393_p9), 736256   ;;  %vm9803_vm10 = vcmask (!%p393_p9), 257024  }
  0x13   : > { %s11022_s17 = smov (!%p393_p9), 109   ;;  %s12429_s1 = sld [smem:[#allocation7_spill]] (!%p393_p9)  ;;  %vm9844_vm11 = vcmask (!%p393_p9), 1040384   ;;  %vm9847_vm12 = vcmask (!%p393_p9), 253952  }
  0x14   : > { %s10881_s23 = smul.u32 (!%p393_p9), 192, %s11123_s6 }
  0x18   : > { %s437_s21 = scalar_select %p436_p10, %s11123_s6, 1 }
  0x19   : > { %v10104_v5 = vld [vmem:[%s12429_s1 + $0x10] sm:$0xff]  ;;  %v10105_v7 = vld [vmem:[%s12429_s1 + $0x18] sm:$0xf]  ;;  %v10106_v46 = vld [vmem:[%s12429_s1 + $0x20] sm:$0xff] }
  0x1a   : > { %s10880_s22 = smul.u32 12, %s437_s21  ;;  %s11023_s21 = smov 108   ;;  %v462_v6 = vsel %vm460_vm0, %v10104_v5, 0  ;;  %v465_v9 = vsel %vm460_vm0, %v10105_v7, 0  ;;  %v2505_v51 = vsel %vm460_vm0, %v10106_v46, 0 }
  0x1b   : > { %v11190_v8 = vand.u32 4294901760, %v462_v6  ;;  %v11196_v11 = vand.u32 4294901760, %v465_v9  ;;  %v11271_v55 = vand.u32 4294901760, %v2505_v51  ;;  %v10107_v56 = vld [vmem:[%s12429_s1 + $0x28] sm:$0xf] }
  0x1c   : > { %s440_s25 = scalar_lea.vmem %s12428_s0, %s10880_s22  ;;  %s11024_s22 = smov 92   ;;  %v2508_v57 = vsel %vm460_vm0, %v10107_v56, 0 }
  0x1d   : > { %v11157_v2 = vld [vmem:[%s440_s25] sm:$0xff]  ;;  %v11165_v4 = vld [vmem:[%s440_s25 + $0x8] sm:$0xf]  ;;  %v11194_v10 = vsub.f32 %v462_v6, %v11190_v8  ;;  %v11202_v14 = vsub.f32 %v465_v9, %v11196_v11  ;;  %v11292_v58 = vsub.f32 %v2505_v51, %v11271_v55  ;;  %v11294_v59 = vand.u32 4294901760, %v2508_v57 }
  0x1e   : > { %451 = vrot.lane.b32.xlu1 %v11157_v2, %s11019_s26  ;;  %v11162_v3 = vcombine.high %v11157_v2, %v11157_v2 }
  0x1f   : > { %v11199_v13 = vand.u32 4294901760, %v11194_v10  ;;  %v11213_v21 = vand.u32 4294901760, %v11202_v14  ;;  %v11303_v62 = vsub.f32 %v2508_v57, %v11294_v59  ;;  %v11317_v6 = vand.u32 4294901760, %v11292_v58 }
  0x20   : > { %453 = vrot.lane.b32.xlu0 %v11162_v3, %s11019_s26 }
  0x21   : > { %v544_v20 = vsub.f32 %v11194_v10, %v11199_v13  ;;  %v555_v30 = vsub.f32 %v11202_v14, %v11213_v21 }
  0x22   : > { %2497 = vrot.lane.b32.xlu1 %v11162_v3, %s11020_s14 }
  0x23   : > { %v11226_v29 = vand.u32 4294901760, %v544_v20  ;;  %v11247_v40 = vand.u32 4294901760, %v555_v30 }
  0x24   : > { %455 = vrot.lane.b32.xlu0 %v11165_v4, %s11019_s26 }
  0x26   : > { %2495 = vrot.lane.b32.xlu1 %v11157_v2, %s11020_s14 }
  0x28   : > { %2499 = vrot.lane.b32.xlu0 %v11165_v4, %s11020_s14  ;;  %s11025_s14 = smov 91  }
  0x2a   : > { %3532 = vrot.lane.b32.xlu1 %v11165_v4, %s11021_s16 }
  0x2c   : > { %3530 = vrot.lane.b32.xlu0 %v11162_v3, %s11021_s16 }
  0x2e   : > { %4563 = vrot.lane.b32.xlu1 %v11162_v3, %s11022_s17 }
  0x30   : > { %3528 = vrot.lane.b32.xlu0 %v11157_v2, %s11021_s16  ;;  %s12366_s16 = scalar_lea.hbm %s12423_s13, %s10881_s23 }
  0x32   : > { %4561 = vrot.lane.b32.xlu1 %v11157_v2, %s11022_s17 }
  0x34   : > { %4565 = vrot.lane.b32.xlu0 %v11165_v4, %s11022_s17 }
  0x36   : > { %5598 = vrot.lane.b32.xlu1 %v11165_v4, %s11023_s21 }
  0x38   : > { %5596 = vrot.lane.b32.xlu0 %v11162_v3, %s11023_s21 }
  0x3a   : > { %6629 = vrot.lane.b32.xlu1 %v11162_v3, %s11024_s22 }
  0x3c   : > { %5594 = vrot.lane.b32.xlu0 %v11157_v2, %s11023_s21  ;;  %s433_s21 = sand.u32 1, %s11008_s28  }
  0x3d   : > { %s10026_s6 = scalar_lea.sflag [#allocation4], %s433_s21 }
  0x3e   : > { %6627 = vrot.lane.b32.xlu1 %v11157_v2, %s11024_s22 }
  0x40   : > { %6631 = vrot.lane.b32.xlu0 %v11165_v4, %s11024_s22  ;;  %s10879_s22 = smul.u32 12, %s433_s21 }
  0x42   : > { %7664 = vrot.lane.b32.xlu1 %v11165_v4, %s11025_s14  ;;  %s435_s24 = scalar_lea.vmem [#allocation3], %s10879_s22  ;;  %s11028_s22 = smov [#allocation3]  }
  0x43   : > { %s10040_s25 = sshll.u32 %s435_s24, 4  ;;  %s10958_s0 = sshll.u32 %s11028_s22, 4  ;;  %s12368_s25 = int_to_ptr.vmem [resolvable:$true] %s10040_s25  ;;  %s10959_s0 = int_to_ptr.vmem [resolvable:$false] %s10958_s0 }
  0x44   : > { %7662 = vrot.lane.b32.xlu0 %v11162_v3, %s11025_s14  ;;  %s10954_s17 = scalar_lea.vmem %s12368_s25, 192  ;;  %p10961_p0 = scmp.lt.s32.totalorder %s12368_s25, %s10959_s0 }
  0x45   : > { %p10955_p11 = scmp.ne.s32.totalorder %s12368_s25, %s10954_s17 }
  0x47   : > { %p10956_p12 = pnand %p10955_p11, %p11140_p5 }
  0x48   : > { %7660 = vrot.lane.b32.xlu0 %v11157_v2, %s11025_s14  ;;  %s11026_s14 = smov 90  }
  0x49   : > { %8695 = vrot.lane.b32.xlu1 %v11162_v3, %s11026_s14  ;;  %p10957_p13 = pneg %p10956_p12 }
  0x4c   : > { %8697 = vrot.lane.b32.xlu0 %v11165_v4, %s11026_s14 }
  0x4d   : > { %8693 = vrot.lane.b32.xlu1 %v11157_v2, %s11026_s14 }
  0x90   : > { %v452_v12 = vpop.permute.xlu1 %451 }
  0x92   : > { %v454_v15 = vpop.permute.xlu0 %453 }
  0x93   : > { %v458_v16 = vsel %vm457_vm1, %v452_v12, %v454_v15  ;;  %v10108_v12 = vld [vmem:[%s12429_s1 + $0x30] sm:$0xff] }
  0x94   : > { %v468_v17 = vsel %vm467_vm2, %v458_v16, 0  ;;  %v2498_v18 = vpop.permute.xlu1 %2497  ;;  %v3538_v20 = vsel %vm460_vm0, %v10108_v12, 0  ;;  %v10110_v12 = vld [vmem:[%s12429_s1 + $0x40] sm:$0xff] }
  0x95   : > { %v11208_v19 = vand.u32 4294901760, %v468_v17 }
  0x96   : > { %v11215_v22 = vpop.permute.xlu0 %455 }
  0x97   : > { %v11218_v23 = vsub.f32 %v468_v17, %v11208_v19  ;;  %v459_v24 = vsel %vm457_vm1, %v454_v15, %v11215_v22  ;;  %v472_v63 = vsel %vm467_vm2, %v11215_v22, 0 }
  0x98   : > { %v470_v25 = vsel %vm467_vm2, %v459_v24, 0  ;;  %v2496_v26 = vpop.permute.xlu1 %2495  ;;  %v11312_v5 = vand.u32 4294901760, %v472_v63 }
  0x99   : > { %v11224_v27 = vand.u32 4294901760, %v470_v25  ;;  %v2502_v28 = vsel %vm2501_vm3, %v2496_v26, %v2498_v18  ;;  %v571_v31 = vand.u32 4294901760, %v11218_v23  ;;  %v11357_v26 = vand.u32 4294901760, %v3538_v20 }
  0x9a   : > { %v11231_v32 = vpop.permute.xlu0 %2499  ;;  %v2510_v33 = vsel %vm467_vm2, %v2502_v28, 0  ;;  %v11332_v17 = vsub.f32 %v472_v63, %v11312_v5 }
  0x9b   : > { %v564_v34 = vsub.f32 %v470_v25, %v11224_v27  ;;  %v2503_v35 = vsel %vm2501_vm3, %v2498_v18, %v11231_v32  ;;  %v11236_v36 = vand.u32 4294901760, %v2510_v33  ;;  %475 = vmatprep.subr.mxu1 %v11224_v27  ;;  %v572_v42 = vsub.f32 %v11218_v23, %v571_v31 }
  0x9c   : > { %v2512_v37 = vsel %vm467_vm2, %v2503_v35, 0  ;;  %477 = vmatpush1.msra.mxu1 %v11208_v19  ;;  %v11298_v61 = vpop.permute.xlu1 %3532  ;;  %v11337_v18 = vand.u32 4294901760, %v11303_v62  ;;  %v11355_v25 = vand.u32 4294901760, %v11332_v17 }
  0x9d   : > { %v11241_v38 = vand.u32 4294901760, %v2512_v37  ;;  %v11244_v39 = vsub.f32 %v2510_v33, %v11236_v36  ;;  %546 = vmatmul.mubr.f32.vlgmr.msra.gmra.mrb[0].mxu1 %v11226_v29  ;;  %v565_v41 = vand.u32 4294901760, %v564_v34  ;;  %v573_v50 = vand.u32 4294901760, %v572_v42 }
  0x9e   : > { %551 = vmatprep.mubr.f32.mxu1 %v11018_v1  ;;  %v3531_v60 = vpop.permute.xlu0 %3530 }
  0x9f   : > { %v2606_v43 = vsub.f32 %v2512_v37, %v11241_v38  ;;  %v566_v44 = vsub.f32 %v564_v34, %v565_v41  ;;  %v2613_v45 = vand.u32 4294901760, %v11244_v39  ;;  %v3536_v0 = vsel %vm3534_vm4, %v3531_v60, %v11298_v61 }
  0xa0   : > { %v3545_v7 = vsel %vm467_vm2, %v3536_v0, 0  ;;  %v4564_v51 = vpop.permute.xlu1 %4563 }
  0xa1   : > { %557 = vmatmul.mubr.f32.gmra.mrb[2].mxu1 %v11247_v40  ;;  %v567_v47 = vand.u32 4294901760, %v566_v44  ;;  %v2607_v48 = vand.u32 4294901760, %v2606_v43  ;;  %v11262_v49 = vsub.f32 %v11244_v39, %v2613_v45  ;;  %v11328_v15 = vand.u32 4294901760, %v3545_v7 }
  0xa2   : > { %637 = vmatprep.mubr.f32.mxu1 %v11018_v1  ;;  %v3529_v9 = vpop.permute.xlu0 %3528 }
  0xa3   : > { %568 = vmatprep.subr.mxu1 %v567_v47  ;;  %v11266_v52 = vsub.f32 %v2606_v43, %v2607_v48  ;;  %v2615_v53 = vand.u32 4294901760, %v11262_v49  ;;  %v3535_v16 = vsel %vm3534_vm4, %v3529_v9, %v3531_v60  ;;  %v11350_v24 = vsub.f32 %v3545_v7, %v11328_v15 }
  0xa4   : > { %574 = vmatpush1.msra.mxu1 %v573_v50  ;;  %v3543_v22 = vsel %vm467_vm2, %v3535_v16, 0  ;;  %v1483_v60 = vsel %vm467_vm2, %v11157_v2, 0  ;;  %v4562_v7 = vpop.permute.xlu1 %4561 }
  0xa5   : > { %639 = vmatmul.mubr.f32.vlgmr.msra.gmra.mrb[0].mxu1 %v11190_v8  ;;  %654 = vmatprep.subr.mxu1 %v564_v34  ;;  %v2609_v54 = vand.u32 4294901760, %v11266_v52  ;;  %v3640_v30 = vand.u32 4294901760, %v11350_v24  ;;  %v11476_v2 = vand.u32 4294901760, %v1483_v60 }
  0xa6   : > { %657 = vmatpush1.msra.mxu1 %v11218_v23  ;;  %644 = vmatprep.mubr.f32.mxu1 %v11018_v1  ;;  %v10109_v23 = vld [vmem:[%s12429_s1 + $0x38] sm:$0xf] }
  0xa7   : > { %738 = vmatprep.subr.mxu1 %v11224_v27  ;;  %2610 = vmatprep.subr.mxu0 %v2609_v54  ;;  %v3541_v28 = vsel %vm460_vm0, %v10109_v23, 0  ;;  %v3641_v35 = vsub.f32 %v11350_v24, %v3640_v30  ;;  %v4571_v23 = vsel %vm460_vm0, %v10110_v12, 0 }
  0xa8   : > { %2616 = vmatpush1.msra.mxu0 %v2615_v53  ;;  %v11374_v33 = vand.u32 4294901760, %v3541_v28 }
  0xa9   : > { %646 = vmatmul.mubr.f32.gmra.mrb[2].mxu1 %v11196_v11  ;;  %2681 = vmatmul.mubr.f32.vlgmr.msra.gmra.mrb[0].mxu0 %v11271_v55 }
  0xaa   : > { %720 = vmatprep.mubr.f32.mxu1 %v11018_v1  ;;  %2696 = vmatprep.subr.mxu0 %v2606_v43  ;;  %v3642_v43 = vand.u32 4294901760, %v3641_v35  ;;  %v11517_v35 = vand.u32 4294901760, %v4571_v23 }
  0xab   : > { %2699 = vmatpush1.msra.mxu0 %v11244_v39  ;;  %2762 = vmatprep.mubr.f32.mxu0 %v11018_v1 }
  0xac   : > { %2780 = vmatprep.subr.mxu0 %v11241_v38 }
  0xad   : > { %723 = vmatmul.mubr.f32.vlgmr.msra.gmra.mrb[0].mxu1 %v11194_v10 }
  0xae   : > { %740 = vmatpush1.msra.mxu1 %v11208_v19  ;;  %728 = vmatprep.mubr.f32.mxu1 %v11018_v1 }
  0xaf   : > { %825 = vmatprep.subr.mxu1 %v565_v41  ;;  %v11394_v41 = vsub.f32 %v3541_v28, %v11374_v33  ;;  %v10111_v28 = vld [vmem:[%s12429_s1 + $0x48] sm:$0xf] }
  0xb1   : > { %731 = vmatmul.mubr.f32.gmra.mrb[2].mxu1 %v11202_v14  ;;  %2765 = vmatmul.mubr.f32.vlgmr.msra.gmra.mrb[0].mxu0 %v11292_v58 }
  0xb2   : > { %803 = vmatprep.mubr.f32.mxu1 %v11018_v1  ;;  %2770 = vmatprep.mubr.f32.mxu0 %v11018_v1 }
  0xb3   : > { %2782 = vmatpush1.msra.mxu0 %v11236_v36 }
  0xb4   : > { %2867 = vmatprep.subr.mxu0 %v2607_v48 }
  0xb5   : > { %807 = vmatmul.mubr.f32.vlgmr.msra.gmra.mrb[0].mxu1 %v11199_v13  ;;  %2773 = vmatmul.mubr.f32.gmra.mrb[2].mxu0 %v11303_v62 }
  0xb6   : > { %829 = vmatpush1.msra.mxu1 %v571_v31  ;;  %812 = vmatprep.mubr.f32.mxu1 %v11018_v1  ;;  %v1078_v31 = vsub.f32 %v11332_v17, %v11355_v25 }
  0xb7   : > { %908 = vmatprep.subr.mxu1 %v11224_v27  ;;  %2845 = vmatprep.mubr.f32.mxu0 %v11018_v1  ;;  %v11361_v27 = vand.u32 4294901760, %v3543_v22 }
  0xb8   : > { %v1079_v37 = vand.u32 4294901760, %v1078_v31 }
  0xb9   : > { %816 = vmatmul.mubr.f32.gmra.mrb[2].mxu1 %v11213_v21  ;;  %2849 = vmatmul.mubr.f32.vlgmr.msra.gmra.mrb[0].mxu0 %v11317_v6  ;;  %v11379_v34 = vsub.f32 %v3543_v22, %v11361_v27 }
  0xba   : > { %892 = vmatprep.mubr.f32.mxu1 %v11018_v1  ;;  %2854 = vmatprep.mubr.f32.mxu0 %v11018_v1 }
  0xbb   : > { %2871 = vmatpush1.msra.mxu0 %v2613_v45  ;;  %v3646_v42 = vand.u32 4294901760, %v11379_v34  ;;  %v11406_v45 = vand.u32 4294901760, %v11394_v41 }
  0xbc   : > { %2950 = vmatprep.subr.mxu0 %v11241_v38 }
  0xbd   : > { %894 = vmatmul.mubr.f32.vlgmr.msra.gmra.mrb[0].mxu1 %v11190_v8  ;;  %2858 = vmatmul.mubr.f32.gmra.mrb[2].mxu0 %v11337_v18  ;;  %v3647_v46 = vsub.f32 %v11379_v34, %v3646_v42  ;;  %v3630_v48 = vsub.f32 %v11394_v41, %v11406_v45 }
  0xbe   : > { %910 = vmatpush1.msra.mxu1 %v11208_v19  ;;  %899 = vmatprep.mubr.f32.mxu1 %v11018_v1  ;;  %v11372_v19 = vsub.f32 %v3538_v20, %v11357_v26  ;;  %v4568_v20 = vsel %vm4567_vm5, %v4562_v7, %v4564_v51 }
  0xbf   : > { %10289 = vmatprep.subr.mxu1 %v11312_v5  ;;  %2934 = vmatprep.mubr.f32.mxu0 %v11018_v1  ;;  %v11424_v50 = vand.u32 4294901760, %v3630_v48  ;;  %v4576_v31 = vsel %vm467_vm2, %v4568_v20, 0 }
  0xc0   : > { %v11391_v39 = vand.u32 4294901760, %v11372_v19 }
  0xc1   : > { %901 = vmatmul.mubr.f32.gmra.mrb[2].mxu1 %v11196_v11  ;;  %2936 = vmatmul.mubr.f32.vlgmr.msra.gmra.mrb[0].mxu0 %v11271_v55 }
  0xc2   : > { %973 = vmatprep.mubr.f32.mxu1 %v11018_v1  ;;  %2941 = vmatprep.mubr.f32.mxu0 %v11018_v1  ;;  %v3619_v44 = vsub.f32 %v11372_v19, %v11391_v39 }
  0xc3   : > { %2952 = vmatpush1.msra.mxu0 %v11236_v36 }
  0xc4   : > { %3550 = vmatprep.subr.mxu0 %v11328_v15  ;;  %v11416_v47 = vand.u32 4294901760, %v3619_v44 }
  0xc5   : > { %975 = vmatmul.mubr.f32.vlgmr.msra.gmra.mrb[0].mxu1 %v11190_v8  ;;  %2943 = vmatmul.mubr.f32.gmra.mrb[2].mxu0 %v11294_v59 }
  0xc6   : > { %10290 = vmatpush3.msra.mxu1 %v11312_v5  ;;  %980 = vmatprep.mubr.f32.mxu1 %v11018_v1 }
  0xc7   : > { %10294 = vmatprep.subr.mxu1 %v1079_v37  ;;  %3015 = vmatprep.mubr.f32.mxu0 %v11018_v1 }
  0xc9   : > { %982 = vmatmul.mubr.f32.gmra.mrb[2].mxu1 %v11196_v11  ;;  %3017 = vmatmul.mubr.f32.vlgmr.msra.gmra.mrb[0].mxu0 %v11271_v55 }
  0xca   : > { %10291 = vmatprep.mubr.f32.mxu1 %v11226_v29  ;;  %3022 = vmatprep.mubr.f32.mxu0 %v11018_v1  ;;  %v3648_v29 = vand.u32 4294901760, %v3647_v46 }
  0xcb   : > { %3552 = vmatpush1.msra.mxu0 %v11361_v27 }
  0xcc   : > { %3643 = vmatprep.subr.mxu0 %v3642_v43 }
  0xcd   : > { %10292 = vmatmul.mubr.f32.vlgmr.msra.gmra.mrb[4].mxu1 %v11247_v40  ;;  %3024 = vmatmul.mubr.f32.gmra.mrb[2].mxu0 %v11294_v59  ;;  %v11447_v40 = vpop.permute.xlu0 %4565 }
  0xce   : > { %10295 = vmatpush3.msra.mxu1 %v1079_v37  ;;  %3615 = vmatprep.mubr.f32.mxu0 %v11018_v1  ;;  %v4574_v37 = vsel %vm460_vm0, %v10111_v28, 0 }
  0xcf   : > { %10299 = vmatprep.subr.mxu1 %v11332_v17  ;;  %10296 = vmatprep.mubr.f32.mxu1 %v11190_v8 }
  0xd1   : > { %3621 = vmatmul.mubr.f32.vlgmr.msra.gmra.mrb[0].mxu0 %v11416_v47 }
  0xd2   : > { %3626 = vmatprep.mubr.f32.mxu0 %v11018_v1  ;;  %3649 = vmatpush1.msra.mxu0 %v3648_v29  ;;  %v11540_v29 = vand.u32 4294901760, %v4574_v37 }
  0xd3   : > { %3729 = vmatprep.subr.mxu0 %v11350_v24  ;;  %v11499_v24 = vsub.f32 %v1483_v60, %v11476_v2 }
  0xd4   : > { %v11564_v60 = vsub.f32 %v4574_v37, %v11540_v29 }
  0xd5   : > { %10297 = vmatmul.mubr.f32.vlgmr.msra.gmra.mrb[4].mxu1 %v11196_v11  ;;  %3632 = vmatmul.mubr.f32.gmra.mrb[2].mxu0 %v11424_v50  ;;  %v1586_v44 = vand.u32 4294901760, %v11499_v24 }
  0xd6   : > { %10300 = vmatpush3.msra.mxu1 %v11332_v17  ;;  %3712 = vmatprep.mubr.f32.mxu0 %v11018_v1  ;;  %v11577_v20 = vand.u32 4294901760, %v11564_v60 }
  0xd7   : > { %10304 = vmatprep.subr.mxu1 %v11312_v5  ;;  %10301 = vmatprep.mubr.f32.mxu1 %v11194_v10  ;;  %v443_v10 = vld [vmem:[%s12429_s1] sm:$0xff] }
  0xd8   : > { %v1478_v56 = vsel %vm460_vm0, %v443_v10, 0 }
  0xd9   : > { %3714 = vmatmul.mubr.f32.vlgmr.msra.gmra.mrb[0].mxu0 %v11357_v26  ;;  %v11468_v63 = vand.u32 4294901760, %v1478_v56 }
  0xda   : > { %3719 = vmatprep.mubr.f32.mxu0 %v11018_v1  ;;  %3732 = vmatpush1.msra.mxu0 %v11379_v34 }
  0xdb   : > { %3813 = vmatprep.subr.mxu0 %v11328_v15  ;;  %v11488_v17 = vsub.f32 %v1478_v56, %v11468_v63 }
  0xdd   : > { %10302 = vmatmul.mubr.f32.vlgmr.msra.gmra.mrb[4].mxu1 %v11202_v14  ;;  %3721 = vmatmul.mubr.f32.gmra.mrb[2].mxu0 %v11374_v33  ;;  %v1485_v14 = vsel %vm467_vm2, %v11162_v3, 0  ;;  %v444_v3 = vld [vmem:[%s12429_s1 + $0x8] sm:$0xf] }
  0xde   : > { %10305 = vmatpush3.msra.mxu1 %v11312_v5  ;;  %3795 = vmatprep.mubr.f32.mxu0 %v11018_v1  ;;  %v11459_v57 = vand.u32 4294901760, %v1485_v14  ;;  %v1481_v9 = vsel %vm460_vm0, %v444_v3, 0 }
  0xdf   : > { %10309 = vmatprep.subr.mxu1 %v11355_v25  ;;  %10306 = vmatprep.mubr.f32.mxu1 %v11199_v13  ;;  %v4569_v13 = vsel %vm4567_vm5, %v4564_v51, %v11447_v40  ;;  %v11491_v22 = vand.u32 4294901760, %v1481_v9 }
  0xe0   : > { %v4578_v0 = vsel %vm467_vm2, %v4569_v13, 0 }
  0xe1   : > { %3798 = vmatmul.mubr.f32.vlgmr.msra.gmra.mrb[0].mxu0 %v11372_v19  ;;  %v11484_v16 = vand.u32 4294901760, %v4578_v0  ;;  %v11515_v34 = vsub.f32 %v1481_v9, %v11491_v22 }
  0xe2   : > { %3803 = vmatprep.mubr.f32.mxu0 %v11018_v1  ;;  %3815 = vmatpush1.msra.mxu0 %v11361_v27 }
  0xe3   : > { %3900 = vmatprep.subr.mxu0 %v3640_v30  ;;  %v11506_v30 = vsub.f32 %v4578_v0, %v11484_v16  ;;  %v11535_v48 = vand.u32 4294901760, %v11515_v34 }
  0xe5   : > { %10307 = vmatmul.mubr.f32.vlgmr.msra.gmra.mrb[4].mxu1 %v11213_v21  ;;  %3806 = vmatmul.mubr.f32.gmra.mrb[2].mxu0 %v11394_v41  ;;  %v11479_v21 = vsub.f32 %v1485_v14, %v11459_v57  ;;  %v4673_v46 = vand.u32 4294901760, %v11506_v30  ;;  %v1587_v14 = vsub.f32 %v11499_v24, %v1586_v44 }
  0xe6   : > { %10310 = vmatpush3.msra.mxu1 %v11355_v25  ;;  %3878 = vmatprep.mubr.f32.mxu0 %v11018_v1 }
  0xe7   : > { %10314 = vmatprep.subr.mxu1 %v11312_v5  ;;  %10311 = vmatprep.mubr.f32.mxu1 %v11190_v8  ;;  %v1580_v25 = vand.u32 4294901760, %v11479_v21  ;;  %v4674_v56 = vsub.f32 %v11506_v30, %v4673_v46  ;;  %v1588_v0 = vand.u32 4294901760, %v1587_v14  ;;  %v5597_v14 = vpop.permute.xlu0 %5596 }
  0xe9   : > { %3882 = vmatmul.mubr.f32.vlgmr.msra.gmra.mrb[0].mxu0 %v11391_v39  ;;  %v1581_v43 = vsub.f32 %v11479_v21, %v1580_v25  ;;  %v4675_v7 = vand.u32 4294901760, %v4674_v56 }
  0xea   : > { %3887 = vmatprep.mubr.f32.mxu0 %v11018_v1  ;;  %3904 = vmatpush1.msra.mxu0 %v3646_v42  ;;  %v11524_v42 = vand.u32 4294901760, %v4576_v31 }
  0xeb   : > { %3983 = vmatprep.subr.mxu0 %v11328_v15  ;;  %v11512_v15 = vand.u32 4294901760, %v11488_v17  ;;  %v1582_v51 = vand.u32 4294901760, %v1581_v43 }
  0xec   : > { %v11545_v10 = vsub.f32 %v4576_v31, %v11524_v42  ;;  %v4663_v31 = vsub.f32 %v11564_v60, %v11577_v20 }
  0xed   : > { %10312 = vmatmul.mubr.f32.vlgmr.msra.gmra.mrb[4].mxu1 %v11196_v11  ;;  %3891 = vmatmul.mubr.f32.gmra.mrb[2].mxu0 %v11406_v45 }
  0xee   : > { %10315 = vmatpush3.msra.mxu1 %v11312_v5  ;;  %3967 = vmatprep.mubr.f32.mxu0 %v11018_v1  ;;  %v1559_v5 = vsub.f32 %v11488_v17, %v11512_v15  ;;  %v11596_v43 = vand.u32 4294901760, %v4663_v31 }
  0xef   : > { %10316 = vmatprep.mubr.f32.mxu1 %v11190_v8  ;;  %1490 = vmatprep.subr.mxu1 %v11459_v57  ;;  %v11538_v8 = vsub.f32 %v4571_v23, %v11517_v35 }
  0xf0   : > { %v11556_v13 = vand.u32 4294901760, %v1559_v5  ;;  %v1487_v5 = vsel %vm467_vm2, %v11165_v4, 0 }
  0xf1   : > { %3969 = vmatmul.mubr.f32.vlgmr.msra.gmra.mrb[0].mxu0 %v11357_v26  ;;  %v11561_v3 = vand.u32 4294901760, %v11538_v8  ;;  %v11624_v56 = vand.u32 4294901760, %v1487_v5 }
  0xf2   : > { %3974 = vmatprep.mubr.f32.mxu0 %v11018_v1  ;;  %3985 = vmatpush1.msra.mxu0 %v11361_v27  ;;  %v1570_v27 = vsub.f32 %v11515_v34, %v11535_v48 }
  0xf3   : > { %4583 = vmatprep.subr.mxu0 %v11484_v16  ;;  %v4652_v12 = vsub.f32 %v11538_v8, %v11561_v3 }
  0xf4   : > { %v11572_v9 = vand.u32 4294901760, %v1570_v27 }
  0xf5   : > { %10317 = vmatmul.mubr.f32.vlgmr.msra.gmra.mrb[4].mxu1 %v11196_v11  ;;  %3976 = vmatmul.mubr.f32.gmra.mrb[2].mxu0 %v11374_v33  ;;  %v4679_v11 = vand.u32 4294901760, %v11545_v10  ;;  %v11588_v28 = vand.u32 4294901760, %v4652_v12 }
  0xf6   : > { %1492 = vmatpush1.msra.mxu1 %v11476_v2  ;;  %1555 = vmatprep.mubr.f32.mxu1 %v11018_v1 }
  0xf7   : > { %4048 = vmatprep.mubr.f32.mxu0 %v11018_v1  ;;  %1583 = vmatprep.subr.mxu1 %v1582_v51  ;;  %v4680_v23 = vsub.f32 %v11545_v10, %v4679_v11  ;;  %v11622_v51 = vpop.permute.xlu1 %5598 }
  0xf8   : > { %v5602_v4 = vsel %vm5600_vm6, %v5597_v14, %v11622_v51 }
  0xf9   : > { %1561 = vmatmul.mubr.f32.vlgmr.msra.gmra.mrb[0].mxu1 %v11556_v13  ;;  %4050 = vmatmul.mubr.f32.vlgmr.msra.gmra.mrb[0].mxu0 %v11357_v26  ;;  %v4681_v37 = vand.u32 4294901760, %v4680_v23 }
  0xfa   : > { %1566 = vmatprep.mubr.f32.mxu1 %v11018_v1  ;;  %4055 = vmatprep.mubr.f32.mxu0 %v11018_v1 }
  0xfb   : > { %1589 = vmatpush1.msra.mxu1 %v1588_v0  ;;  %4585 = vmatpush1.msra.mxu0 %v11524_v42  ;;  %v10113_v0 = vld [vmem:[%s12429_s1 + $0x58] sm:$0xf] }
  0xfc   : > { %1669 = vmatprep.subr.mxu1 %v11479_v21  ;;  %4676 = vmatprep.subr.mxu0 %v4675_v7  ;;  %v11639_v21 = vsub.f32 %v1487_v5, %v11624_v56 }
  0xfd   : > { %1572 = vmatmul.mubr.f32.gmra.mrb[2].mxu1 %v11572_v9  ;;  %4057 = vmatmul.mubr.f32.gmra.mrb[2].mxu0 %v11374_v33 }
  0xfe   : > { %1652 = vmatprep.mubr.f32.mxu1 %v11018_v1  ;;  %4648 = vmatprep.mubr.f32.mxu0 %v11018_v1 }
 0x101   : > { %1654 = vmatmul.mubr.f32.vlgmr.msra.gmra.mrb[0].mxu1 %v11468_v63  ;;  %4654 = vmatmul.mubr.f32.vlgmr.msra.gmra.mrb[0].mxu0 %v11588_v28 }
 0x102   : > { %1659 = vmatprep.mubr.f32.mxu1 %v11018_v1  ;;  %4659 = vmatprep.mubr.f32.mxu0 %v11018_v1 }
 0x103   : > { %1672 = vmatpush1.msra.mxu1 %v11499_v24  ;;  %4682 = vmatpush1.msra.mxu0 %v4681_v37  ;;  %v5595_v24 = vpop.permute.xlu0 %5594 }
 0x104   : > { %1753 = vmatprep.subr.mxu1 %v11459_v57  ;;  %4762 = vmatprep.subr.mxu0 %v11506_v30 }
 0x105   : > { %1661 = vmatmul.mubr.f32.gmra.mrb[2].mxu1 %v11491_v22  ;;  %4665 = vmatmul.mubr.f32.gmra.mrb[2].mxu0 %v11596_v43 }
 0x106   : > { %1735 = vmatprep.mubr.f32.mxu1 %v11018_v1  ;;  %4745 = vmatprep.mubr.f32.mxu0 %v11018_v1 }
 0x109   : > { %1738 = vmatmul.mubr.f32.vlgmr.msra.gmra.mrb[0].mxu1 %v11488_v17  ;;  %4747 = vmatmul.mubr.f32.vlgmr.msra.gmra.mrb[0].mxu0 %v11517_v35 }
 0x10a   : > { %1743 = vmatprep.mubr.f32.mxu1 %v11018_v1  ;;  %4752 = vmatprep.mubr.f32.mxu0 %v11018_v1 }
 0x10b   : > { %1755 = vmatpush1.msra.mxu1 %v11476_v2  ;;  %4765 = vmatpush1.msra.mxu0 %v11545_v10 }
 0x10c   : > { %1840 = vmatprep.subr.mxu1 %v1580_v25  ;;  %4846 = vmatprep.subr.mxu0 %v11484_v16  ;;  %v5611_v25 = vsel %vm467_vm2, %v5602_v4, 0 }
 0x10d   : > { %1746 = vmatmul.mubr.f32.gmra.mrb[2].mxu1 %v11515_v34  ;;  %4754 = vmatmul.mubr.f32.gmra.mrb[2].mxu0 %v11540_v29  ;;  %v11649_v30 = vand.u32 4294901760, %v5611_v25 }
 0x10e   : > { %1818 = vmatprep.mubr.f32.mxu1 %v11018_v1  ;;  %4828 = vmatprep.mubr.f32.mxu0 %v11018_v1 }
 0x10f   : > { %v11669_v7 = vsub.f32 %v5611_v25, %v11649_v30 }
 0x111   : > { %1822 = vmatmul.mubr.f32.vlgmr.msra.gmra.mrb[0].mxu1 %v11512_v15  ;;  %4831 = vmatmul.mubr.f32.vlgmr.msra.gmra.mrb[0].mxu0 %v11538_v8  ;;  %v5706_v31 = vand.u32 4294901760, %v11669_v7 }
 0x112   : > { %1827 = vmatprep.mubr.f32.mxu1 %v11018_v1  ;;  %4836 = vmatprep.mubr.f32.mxu0 %v11018_v1 }
 0x113   : > { %1844 = vmatpush1.msra.mxu1 %v1586_v44  ;;  %4848 = vmatpush1.msra.mxu0 %v11524_v42  ;;  %v11652_v44 = vand.u32 4294901760, %v11639_v21  ;;  %v5707_v4 = vsub.f32 %v11669_v7, %v5706_v31 }
 0x114   : > { %1923 = vmatprep.subr.mxu1 %v11459_v57  ;;  %4933 = vmatprep.subr.mxu0 %v4673_v46  ;;  %v10112_v57 = vld [vmem:[%s12429_s1 + $0x50] sm:$0xff]  ;;  %v5601_v46 = vsel %vm5600_vm6, %v5595_v24, %v5597_v14 }
 0x115   : > { %1831 = vmatmul.mubr.f32.gmra.mrb[2].mxu1 %v11535_v48  ;;  %4839 = vmatmul.mubr.f32.gmra.mrb[2].mxu0 %v11564_v60  ;;  %v5604_v27 = vsel %vm460_vm0, %v10112_v57, 0  ;;  %v5609_v12 = vsel %vm467_vm2, %v5601_v46, 0  ;;  %v2093_v23 = vsub.f32 %v11639_v21, %v11652_v44  ;;  %v5708_v57 = vand.u32 4294901760, %v5707_v4 }
 0x116   : > { %1907 = vmatprep.mubr.f32.mxu1 %v11018_v1  ;;  %4911 = vmatprep.mubr.f32.mxu0 %v11018_v1  ;;  %v11681_v10 = vand.u32 4294901760, %v5609_v12 }
 0x118   : > { %v11696_v14 = vsub.f32 %v5609_v12, %v11681_v10 }
 0x119   : > { %1909 = vmatmul.mubr.f32.vlgmr.msra.gmra.mrb[0].mxu1 %v11468_v63  ;;  %4915 = vmatmul.mubr.f32.vlgmr.msra.gmra.mrb[0].mxu0 %v11561_v3 }
 0x11a   : > { %1914 = vmatprep.mubr.f32.mxu1 %v11018_v1  ;;  %4920 = vmatprep.mubr.f32.mxu0 %v11018_v1 }
 0x11b   : > { %1925 = vmatpush1.msra.mxu1 %v11476_v2  ;;  %4937 = vmatpush1.msra.mxu0 %v4679_v11  ;;  %v11676_v2 = vand.u32 4294901760, %v5604_v27  ;;  %v2094_v11 = vand.u32 4294901760, %v2093_v23 }
 0x11c   : > { %5016 = vmatprep.subr.mxu0 %v11484_v16  ;;  %10319 = vmatprep.subr.mxu1 %v11624_v56  ;;  %v5607_v16 = vsel %vm460_vm0, %v10113_v0, 0 }
 0x11d   : > { %1916 = vmatmul.mubr.f32.gmra.mrb[2].mxu1 %v11491_v22  ;;  %4924 = vmatmul.mubr.f32.gmra.mrb[2].mxu0 %v11577_v20  ;;  %v11687_v37 = vsub.f32 %v5604_v27, %v11676_v2  ;;  %v11689_v5 = vand.u32 4294901760, %v5607_v16 }
 0x11e   : > { %1988 = vmatprep.mubr.f32.mxu1 %v11018_v1  ;;  %5000 = vmatprep.mubr.f32.mxu0 %v11018_v1 }
 0x11f   : > { %v11705_v25 = vand.u32 4294901760, %v11687_v37  ;;  %v11708_v24 = vsub.f32 %v5607_v16, %v11689_v5 }
 0x121   : > { %1990 = vmatmul.mubr.f32.vlgmr.msra.gmra.mrb[0].mxu1 %v11468_v63  ;;  %5002 = vmatmul.mubr.f32.vlgmr.msra.gmra.mrb[0].mxu0 %v11517_v35  ;;  %v5685_v46 = vsub.f32 %v11687_v37, %v11705_v25  ;;  %v11718_v27 = vand.u32 4294901760, %v11708_v24 }
 0x122   : > { %1995 = vmatprep.mubr.f32.mxu1 %v11018_v1  ;;  %5007 = vmatprep.mubr.f32.mxu0 %v11018_v1 }
 0x123   : > { %10320 = vmatpush3.msra.mxu1 %v11624_v56  ;;  %5018 = vmatpush1.msra.mxu0 %v11524_v42  ;;  %v5712_v42 = vand.u32 4294901760, %v11696_v14  ;;  %v5696_v0 = vsub.f32 %v11708_v24, %v11718_v27 }
 0x124   : > { %10324 = vmatprep.subr.mxu1 %v2094_v11  ;;  %5616 = vmatprep.subr.mxu0 %v11649_v30 }
 0x125   : > { %1997 = vmatmul.mubr.f32.gmra.mrb[2].mxu1 %v11491_v22  ;;  %5009 = vmatmul.mubr.f32.gmra.mrb[2].mxu0 %v11540_v29  ;;  %v11735_v23 = vand.u32 4294901760, %v5696_v0 }
 0x126   : > { %10321 = vmatprep.mubr.f32.mxu1 %v11556_v13  ;;  %5081 = vmatprep.mubr.f32.mxu0 %v11018_v1  ;;  %v5713_v13 = vsub.f32 %v11696_v14, %v5712_v42 }
 0x128   : > { %v5714_v12 = vand.u32 4294901760, %v5713_v13 }
 0x129   : > { %10322 = vmatmul.mubr.f32.vlgmr.msra.gmra.mrb[4].mxu1 %v11572_v9  ;;  %5083 = vmatmul.mubr.f32.vlgmr.msra.gmra.mrb[0].mxu0 %v11517_v35  ;;  %v11728_v9 = vand.u32 4294901760, %v5685_v46 }
 0x12a   : > { %5088 = vmatprep.mubr.f32.mxu0 %v11018_v1  ;;  %10325 = vmatpush3.msra.mxu1 %v2094_v11 }
 0x12b   : > { %10326 = vmatprep.mubr.f32.mxu1 %v11468_v63  ;;  %5618 = vmatpush1.msra.mxu0 %v11681_v10 }
 0x12c   : > { %10329 = vmatprep.subr.mxu1 %v11639_v21  ;;  %5709 = vmatprep.subr.mxu0 %v5708_v57 }
 0x12d   : > { %5090 = vmatmul.mubr.f32.gmra.mrb[2].mxu0 %v11540_v29 }
 0x12e   : > { %5681 = vmatprep.mubr.f32.mxu0 %v11018_v1 }
 0x131   : > { %10327 = vmatmul.mubr.f32.vlgmr.msra.gmra.mrb[4].mxu1 %v11491_v22  ;;  %5687 = vmatmul.mubr.f32.vlgmr.msra.gmra.mrb[0].mxu0 %v11728_v9 }
 0x132   : > { %5692 = vmatprep.mubr.f32.mxu0 %v11018_v1  ;;  %10330 = vmatpush3.msra.mxu1 %v11639_v21 }
 0x133   : > { %10331 = vmatprep.mubr.f32.mxu1 %v11488_v17  ;;  %5715 = vmatpush1.msra.mxu0 %v5714_v12  ;;  %v11754_v17 = vpop.permute.xlu0 %6631 }
 0x134   : > { %10334 = vmatprep.subr.mxu1 %v11624_v56  ;;  %5795 = vmatprep.subr.mxu0 %v11669_v7 }
 0x135   : > { %5698 = vmatmul.mubr.f32.gmra.mrb[2].mxu0 %v11735_v23 }
 0x136   : > { %5778 = vmatprep.mubr.f32.mxu0 %v11018_v1 }
 0x139   : > { %10332 = vmatmul.mubr.f32.vlgmr.msra.gmra.mrb[4].mxu1 %v11515_v34  ;;  %5780 = vmatmul.mubr.f32.vlgmr.msra.gmra.mrb[0].mxu0 %v11676_v2  ;;  %v6630_v34 = vpop.permute.xlu1 %6629 }
 0x13a   : > { %5785 = vmatprep.mubr.f32.mxu0 %v11018_v1  ;;  %10335 = vmatpush3.msra.mxu1 %v11624_v56 }
 0x13b   : > { %10336 = vmatprep.mubr.f32.mxu1 %v11512_v15  ;;  %5798 = vmatpush1.msra.mxu0 %v11696_v14  ;;  %v6635_v15 = vsel %vm6633_vm7, %v6630_v34, %v11754_v17 }
 0x13c   : > { %10339 = vmatprep.subr.mxu1 %v11652_v44  ;;  %5879 = vmatprep.subr.mxu0 %v11649_v30 }
 0x13d   : > { %5787 = vmatmul.mubr.f32.gmra.mrb[2].mxu0 %v11689_v5  ;;  %v6628_v21 = vpop.permute.xlu1 %6627 }
 0x13e   : > { %5861 = vmatprep.mubr.f32.mxu0 %v11018_v1  ;;  %v6634_v7 = vsel %vm6633_vm7, %v6628_v21, %v6630_v34 }
 0x141   : > { %10337 = vmatmul.mubr.f32.vlgmr.msra.gmra.mrb[4].mxu1 %v11535_v48  ;;  %5864 = vmatmul.mubr.f32.vlgmr.msra.gmra.mrb[0].mxu0 %v11687_v37  ;;  %v6644_v48 = vsel %vm467_vm2, %v6635_v15, 0 }
 0x142   : > { %5869 = vmatprep.mubr.f32.mxu0 %v11018_v1  ;;  %10340 = vmatpush3.msra.mxu1 %v11652_v44  ;;  %v10114_v44 = vld [vmem:[%s12429_s1 + $0x60] sm:$0xff]  ;;  %v11773_v16 = vand.u32 4294901760, %v6644_v48 }
 0x143   : > { %10341 = vmatprep.mubr.f32.mxu1 %v11468_v63  ;;  %5881 = vmatpush1.msra.mxu0 %v11681_v10  ;;  %v6637_v11 = vsel %vm460_vm0, %v10114_v44, 0 }
 0x144   : > { %10344 = vmatprep.subr.mxu1 %v11624_v56  ;;  %5966 = vmatprep.subr.mxu0 %v5706_v31  ;;  %v10115_v31 = vld [vmem:[%s12429_s1 + $0x68] sm:$0xf]  ;;  %v11789_v4 = vsub.f32 %v6644_v48, %v11773_v16  ;;  %v11798_v57 = vand.u32 4294901760, %v6637_v11 }
 0x145   : > { %5872 = vmatmul.mubr.f32.gmra.mrb[2].mxu0 %v11708_v24  ;;  %v6640_v14 = vsel %vm460_vm0, %v10115_v31, 0 }
 0x146   : > { %5944 = vmatprep.mubr.f32.mxu0 %v11018_v1  ;;  %v11812_v0 = vsub.f32 %v6637_v11, %v11798_v57  ;;  %v11814_v12 = vand.u32 4294901760, %v6640_v14 }
 0x148   : > { %v11831_v52 = vand.u32 4294901760, %v11812_v0 }
 0x149   : > { %10342 = vmatmul.mubr.f32.vlgmr.msra.gmra.mrb[4].mxu1 %v11491_v22  ;;  %5948 = vmatmul.mubr.f32.vlgmr.msra.gmra.mrb[0].mxu0 %v11705_v25 }
 0x14a   : > { %5953 = vmatprep.mubr.f32.mxu0 %v11018_v1  ;;  %10345 = vmatpush3.msra.mxu1 %v11624_v56  ;;  %v2514_v56 = vsel %vm467_vm2, %v11231_v32, 0  ;;  %v6739_v32 = vand.u32 4294901760, %v11789_v4  ;;  %v6718_v21 = vsub.f32 %v11812_v0, %v11831_v52 }
 0x14b   : > { %10346 = vmatprep.mubr.f32.mxu1 %v11468_v63  ;;  %2517 = vmatprep.subr.mxu1 %v11241_v38  ;;  %v2586_v63 = vsub.f32 %v11292_v58, %v11317_v6  ;;  %v6642_v38 = vsel %vm467_vm2, %v6634_v7, 0 }
 0x14c   : > { %5970 = vmatpush1.msra.mxu0 %v5712_v42  ;;  %v11802_v42 = vand.u32 4294901760, %v2514_v56  ;;  %v11804_v46 = vand.u32 4294901760, %v6642_v38  ;;  %v6740_v34 = vsub.f32 %v11789_v4, %v6739_v32  ;;  %v11858_v7 = vand.u32 4294901760, %v6718_v21  ;;  %v10117_v21 = vld [vmem:[%s12429_s1 + $0x78] sm:$0xf] }
 0x14d   : > { %5957 = vmatmul.mubr.f32.gmra.mrb[2].mxu0 %v11718_v27  ;;  %6049 = vmatprep.subr.mxu0 %v11649_v30  ;;  %v2587_v13 = vand.u32 4294901760, %v2586_v63  ;;  %v2597_v30 = vsub.f32 %v11303_v62, %v11337_v18 }
 0x14e   : > { %6033 = vmatprep.mubr.f32.mxu0 %v11018_v1  ;;  %v3118_v15 = vsub.f32 %v2514_v56, %v11802_v42  ;;  %v6741_v48 = vand.u32 4294901760, %v6740_v34 }
 0x150   : > { %v11846_v44 = vand.u32 4294901760, %v3118_v15 }
 0x151   : > { %10347 = vmatmul.mubr.f32.vlgmr.msra.gmra.mrb[4].mxu1 %v11491_v22  ;;  %6035 = vmatmul.mubr.f32.vlgmr.msra.gmra.mrb[0].mxu0 %v11676_v2  ;;  %v11823_v22 = vsub.f32 %v6642_v38, %v11804_v46 }
 0x152   : > { %2519 = vmatpush1.msra.mxu1 %v11236_v36  ;;  %2582 = vmatprep.mubr.f32.mxu1 %v11018_v1  ;;  %v2598_v36 = vand.u32 4294901760, %v2597_v30  ;;  %v3120_v11 = vsub.f32 %v3118_v15, %v11846_v44 }
 0x153   : > { %10559 = vmatprep.subr.mxu1 %v2609_v54  ;;  %6040 = vmatprep.mubr.f32.mxu0 %v11018_v1  ;;  %v11834_v54 = vsub.f32 %v6640_v14, %v11814_v12  ;;  %v11881_v14 = vpop.permute.xlu1 %7664 }
 0x154   : > { %6051 = vmatpush1.msra.mxu0 %v11681_v10  ;;  %v6745_v10 = vand.u32 4294901760, %v11823_v22  ;;  %v3121_v63 = vand.u32 4294901760, %v3120_v11 }
 0x155   : > { %2588 = vmatmul.mubr.f32.vlgmr.msra.gmra.mrb[0].mxu1 %v2587_v13  ;;  %6042 = vmatmul.mubr.f32.gmra.mrb[2].mxu0 %v11689_v5  ;;  %v11849_v49 = vand.u32 4294901760, %v11834_v54 }
 0x156   : > { %10560 = vmatpush1.msra.mxu1 %v2615_v53  ;;  %2593 = vmatprep.mubr.f32.mxu1 %v11018_v1  ;;  %v6746_v53 = vsub.f32 %v11823_v22, %v6745_v10 }
 0x157   : > { %10349 = vmatprep.subr.mxu1 %v11802_v42  ;;  %6114 = vmatprep.mubr.f32.mxu0 %v11018_v1  ;;  %v6729_v31 = vsub.f32 %v11834_v54, %v11849_v49 }
 0x158   : > { %6649 = vmatprep.subr.mxu0 %v11773_v16  ;;  %v6747_v56 = vand.u32 4294901760, %v6746_v53 }
 0x159   : > { %2599 = vmatmul.mubr.f32.gmra.mrb[2].mxu1 %v2598_v36  ;;  %6116 = vmatmul.mubr.f32.vlgmr.msra.gmra.mrb[0].mxu0 %v11676_v2  ;;  %v11866_v38 = vand.u32 4294901760, %v6729_v31 }
 0x15a   : > { %6121 = vmatprep.mubr.f32.mxu0 %v11018_v1  ;;  %2686 = vmatprep.mubr.f32.mxu1 %v11018_v1 }
 0x15b   : > { %6651 = vmatpush1.msra.mxu0 %v11804_v46 }
 0x15c   : > { %6742 = vmatprep.subr.mxu0 %v6741_v48 }
 0x15d   : > { %6123 = vmatmul.mubr.f32.gmra.mrb[2].mxu0 %v11689_v5 }
 0x15e   : > { %6714 = vmatprep.mubr.f32.mxu0 %v11018_v1 }
 0x161   : > { %2688 = vmatmul.mubr.f32.vlgmr.msra.gmra.mrb[2].mxu1 %v11294_v59  ;;  %6720 = vmatmul.mubr.f32.vlgmr.msra.gmra.mrb[0].mxu0 %v11858_v7 }
 0x162   : > { %10350 = vmatpush3.msra.mxu1 %v11802_v42  ;;  %10351 = vmatprep.mubr.f32.mxu1 %v2587_v13  ;;  %v7663_v13 = vpop.permute.xlu0 %7662 }
 0x163   : > { %10354 = vmatprep.subr.mxu1 %v3121_v63  ;;  %6725 = vmatprep.mubr.f32.mxu0 %v11018_v1  ;;  %v7668_v30 = vsel %vm7666_vm8, %v7663_v13, %v11881_v14 }
 0x164   : > { %6748 = vmatpush1.msra.mxu0 %v6747_v56  ;;  %v7677_v34 = vsel %vm467_vm2, %v7668_v30, 0 }
 0x165   : > { %10352 = vmatmul.mubr.f32.vlgmr.msra.gmra.mrb[4].mxu1 %v2598_v36  ;;  %6731 = vmatmul.mubr.f32.gmra.mrb[2].mxu0 %v11866_v38 }
 0x166   : > { %10355 = vmatpush3.msra.mxu1 %v3121_v63  ;;  %6811 = vmatprep.mubr.f32.mxu0 %v11018_v1 }
 0x167   : > { %10359 = vmatprep.subr.mxu1 %v3118_v15  ;;  %10356 = vmatprep.mubr.f32.mxu1 %v11271_v55 }
 0x168   : > { %6828 = vmatprep.subr.mxu0 %v11789_v4  ;;  %v10116_v4 = vld [vmem:[%s12429_s1 + $0x70] sm:$0xff] }
 0x169   : > { %6813 = vmatmul.mubr.f32.vlgmr.msra.gmra.mrb[0].mxu0 %v11798_v57 }
 0x16a   : > { %6818 = vmatprep.mubr.f32.mxu0 %v11018_v1  ;;  %6831 = vmatpush1.msra.mxu0 %v11823_v22 }
 0x16b   : > { %6912 = vmatprep.subr.mxu0 %v11773_v16 }
 0x16d   : > { %10357 = vmatmul.mubr.f32.vlgmr.msra.gmra.mrb[4].mxu1 %v11294_v59  ;;  %6820 = vmatmul.mubr.f32.gmra.mrb[2].mxu0 %v11814_v12 }
 0x16e   : > { %10360 = vmatpush3.msra.mxu1 %v3118_v15  ;;  %6894 = vmatprep.mubr.f32.mxu0 %v11018_v1  ;;  %v11899_v15 = vand.u32 4294901760, %v7677_v34 }
 0x16f   : > { %10364 = vmatprep.subr.mxu1 %v11802_v42  ;;  %10361 = vmatprep.mubr.f32.mxu1 %v11292_v58  ;;  %v7661_v58 = vpop.permute.xlu0 %7660 }
 0x170   : > { %v11916_v48 = vsub.f32 %v7677_v34, %v11899_v15 }
 0x171   : > { %6897 = vmatmul.mubr.f32.vlgmr.msra.gmra.mrb[0].mxu0 %v11812_v0 }
 0x172   : > { %6902 = vmatprep.mubr.f32.mxu0 %v11018_v1  ;;  %6914 = vmatpush1.msra.mxu0 %v11804_v46 }
 0x173   : > { %6999 = vmatprep.subr.mxu0 %v6739_v32  ;;  %v7667_v32 = vsel %vm7666_vm8, %v7661_v58, %v7663_v13 }
 0x175   : > { %10362 = vmatmul.mubr.f32.vlgmr.msra.gmra.mrb[4].mxu1 %v11303_v62  ;;  %6905 = vmatmul.mubr.f32.gmra.mrb[2].mxu0 %v11834_v54  ;;  %v3547_v62 = vsel %vm467_vm2, %v11298_v61, 0  ;;  %v7675_v61 = vsel %vm467_vm2, %v7667_v32, 0 }
 0x176   : > { %10365 = vmatpush3.msra.mxu1 %v11802_v42  ;;  %6977 = vmatprep.mubr.f32.mxu0 %v11018_v1  ;;  %v11912_v36 = vand.u32 4294901760, %v3547_v62 }
 0x177   : > { %10369 = vmatprep.subr.mxu1 %v11846_v44  ;;  %10366 = vmatprep.mubr.f32.mxu1 %v11317_v6  ;;  %v7670_v6 = vsel %vm460_vm0, %v10116_v4, 0 }
 0x178   : > { %v11924_v22 = vand.u32 4294901760, %v7670_v6  ;;  %v4151_v53 = vsub.f32 %v3547_v62, %v11912_v36 }
 0x179   : > { %6981 = vmatmul.mubr.f32.vlgmr.msra.gmra.mrb[0].mxu0 %v11831_v52 }
 0x17a   : > { %6986 = vmatprep.mubr.f32.mxu0 %v11018_v1  ;;  %7003 = vmatpush1.msra.mxu0 %v6745_v10  ;;  %v7673_v10 = vsel %vm460_vm0, %v10117_v21, 0  ;;  %v11937_v11 = vsub.f32 %v7670_v6, %v11924_v22  ;;  %v11947_v56 = vand.u32 4294901760, %v4151_v53 }
 0x17b   : > { %7082 = vmatprep.subr.mxu0 %v11773_v16  ;;  %v11928_v16 = vand.u32 4294901760, %v7675_v61 }
 0x17c   : > { %v11955_v13 = vand.u32 4294901760, %v11937_v11  ;;  %v4153_v34 = vsub.f32 %v4151_v53, %v11947_v56 }
 0x17d   : > { %10367 = vmatmul.mubr.f32.vlgmr.msra.gmra.mrb[4].mxu1 %v11337_v18  ;;  %6990 = vmatmul.mubr.f32.gmra.mrb[2].mxu0 %v11849_v49  ;;  %v7772_v18 = vand.u32 4294901760, %v11916_v48  ;;  %v11944_v31 = vsub.f32 %v7675_v61, %v11928_v16 }
 0x17e   : > { %10370 = vmatpush3.msra.mxu1 %v11846_v44  ;;  %7066 = vmatprep.mubr.f32.mxu0 %v11018_v1  ;;  %v11939_v44 = vand.u32 4294901760, %v7673_v10  ;;  %v7751_v4 = vsub.f32 %v11937_v11, %v11955_v13 }
 0x17f   : > { %10374 = vmatprep.subr.mxu1 %v11802_v42  ;;  %10371 = vmatprep.mubr.f32.mxu1 %v11271_v55  ;;  %v7773_v63 = vsub.f32 %v11916_v48, %v7772_v18  ;;  %v7778_v30 = vand.u32 4294901760, %v11944_v31 }
 0x180   : > { %v11979_v32 = vand.u32 4294901760, %v7751_v4 }
 0x181   : > { %7068 = vmatmul.mubr.f32.vlgmr.msra.gmra.mrb[0].mxu0 %v11798_v57  ;;  %v7774_v58 = vand.u32 4294901760, %v7773_v63 }
 0x182   : > { %7073 = vmatprep.mubr.f32.mxu0 %v11018_v1  ;;  %7084 = vmatpush1.msra.mxu0 %v11804_v46  ;;  %v11958_v46 = vsub.f32 %v7673_v10, %v11939_v44 }
 0x183   : > { %7682 = vmatprep.subr.mxu0 %v11899_v15 }
 0x184   : > { %v11970_v62 = vand.u32 4294901760, %v11958_v46 }
 0x185   : > { %10372 = vmatmul.mubr.f32.vlgmr.msra.gmra.mrb[4].mxu1 %v11294_v59  ;;  %7075 = vmatmul.mubr.f32.gmra.mrb[2].mxu0 %v11814_v12 }
 0x186   : > { %10375 = vmatpush3.msra.mxu1 %v11802_v42  ;;  %7147 = vmatprep.mubr.f32.mxu0 %v11018_v1  ;;  %v4154_v42 = vand.u32 4294901760, %v4153_v34  ;;  %v7762_v6 = vsub.f32 %v11958_v46, %v11970_v62 }
 0x187   : > { %10376 = vmatprep.mubr.f32.mxu1 %v11271_v55  ;;  %10379 = vmatprep.subr.mxu1 %v11912_v36  ;;  %v7779_v55 = vsub.f32 %v11944_v31, %v7778_v30 }
 0x188   : > { %v11987_v21 = vand.u32 4294901760, %v7762_v6 }
 0x189   : > { %7149 = vmatmul.mubr.f32.vlgmr.msra.gmra.mrb[0].mxu0 %v11798_v57  ;;  %v7780_v61 = vand.u32 4294901760, %v7779_v55 }
 0x18a   : > { %7154 = vmatprep.mubr.f32.mxu0 %v11018_v1  ;;  %7684 = vmatpush1.msra.mxu0 %v11928_v16 }
 0x18b   : > { %7775 = vmatprep.subr.mxu0 %v7774_v58  ;;  %v10119_v58 = vld [vmem:[%s12429_s1 + $0x88] sm:$0xf] }
 0x18d   : > { %10377 = vmatmul.mubr.f32.vlgmr.msra.gmra.mrb[4].mxu1 %v11294_v59  ;;  %7156 = vmatmul.mubr.f32.gmra.mrb[2].mxu0 %v11814_v12  ;;  %v12002_v59 = vpop.permute.xlu0 %8697 }
 0x18e   : > { %10380 = vmatpush3.msra.mxu1 %v11912_v36  ;;  %7747 = vmatprep.mubr.f32.mxu0 %v11018_v1 }
 0x18f   : > { %10384 = vmatprep.subr.mxu1 %v4154_v42  ;;  %10381 = vmatprep.mubr.f32.mxu1 %v11416_v47  ;;  %v8696_v47 = vpop.permute.xlu1 %8695 }
 0x191   : > { %7753 = vmatmul.mubr.f32.vlgmr.msra.gmra.mrb[0].mxu0 %v11979_v32 }
 0x192   : > { %7758 = vmatprep.mubr.f32.mxu0 %v11018_v1  ;;  %7781 = vmatpush1.msra.mxu0 %v7780_v61 }
 0x193   : > { %7861 = vmatprep.subr.mxu0 %v11916_v48  ;;  %v10118_v48 = vld [vmem:[%s12429_s1 + $0x80] sm:$0xff]  ;;  %s10960_s1 = scalar_lea.vmem %s10959_s0, 384 }
 0x194   : > { %p10962_p1 = scmp.lt.s32.totalorder %s10960_s1, %s10954_s17 }
 0x195   : > { %10382 = vmatmul.mubr.f32.vlgmr.msra.gmra.mrb[4].mxu1 %v11424_v50  ;;  %7764 = vmatmul.mubr.f32.gmra.mrb[2].mxu0 %v11987_v21  ;;  %v8701_v50 = vsel %vm8699_vm9, %v8696_v47, %v12002_v59 }
 0x196   : > { %10385 = vmatpush3.msra.mxu1 %v4154_v42  ;;  %7844 = vmatprep.mubr.f32.mxu0 %v11018_v1  ;;  %v8710_v10 = vsel %vm467_vm2, %v8701_v50, 0  ;;  %p10963_p2 = por %p10962_p1, %p10961_p0 }
 0x197   : > { %10389 = vmatprep.subr.mxu1 %v4151_v53  ;;  %10386 = vmatprep.mubr.f32.mxu1 %v11357_v26 }
 0x198   : > { %p10964_p3 = pnand %p10963_p2, %p10957_p13 }
 0x199   : > { %7846 = vmatmul.mubr.f32.vlgmr.msra.gmra.mrb[0].mxu0 %v11924_v22 }
 0x19a   : > { %7851 = vmatprep.mubr.f32.mxu0 %v11018_v1  ;;  %7864 = vmatpush1.msra.mxu0 %v11944_v31 }
 0x19b   : > { %7945 = vmatprep.subr.mxu0 %v11899_v15 }
 0x19d   : > { %10387 = vmatmul.mubr.f32.vlgmr.msra.gmra.mrb[4].mxu1 %v11374_v33  ;;  %7853 = vmatmul.mubr.f32.gmra.mrb[2].mxu0 %v11939_v44 }
 0x19e   : > { %10390 = vmatpush3.msra.mxu1 %v4151_v53  ;;  %7927 = vmatprep.mubr.f32.mxu0 %v11018_v1  ;;  %v12020_v53 = vand.u32 4294901760, %v8710_v10 }
 0x19f   : > { %10394 = vmatprep.subr.mxu1 %v11912_v36  ;;  %10391 = vmatprep.mubr.f32.mxu1 %v11372_v19  ;;  %v8694_v19 = vpop.permute.xlu1 %8693 }
 0x1a0   : > { %v12037_v34 = vsub.f32 %v8710_v10, %v12020_v53 }
 0x1a1   : > { %7930 = vmatmul.mubr.f32.vlgmr.msra.gmra.mrb[0].mxu0 %v11937_v11 }
 0x1a2   : > { %7935 = vmatprep.mubr.f32.mxu0 %v11018_v1  ;;  %7947 = vmatpush1.msra.mxu0 %v11928_v16 }
 0x1a3   : > { %8032 = vmatprep.subr.mxu0 %v7772_v18  ;;  %v8700_v18 = vsel %vm8699_vm9, %v8694_v19, %v8696_v47 }
 0x1a5   : > { %10392 = vmatmul.mubr.f32.vlgmr.msra.gmra.mrb[4].mxu1 %v11394_v41  ;;  %7938 = vmatmul.mubr.f32.gmra.mrb[2].mxu0 %v11958_v46  ;;  %v4580_v41 = vsel %vm467_vm2, %v11447_v40, 0  ;;  %v8708_v40 = vsel %vm467_vm2, %v8700_v18, 0 }
 0x1a6   : > { %10395 = vmatpush3.msra.mxu1 %v11912_v36  ;;  %8010 = vmatprep.mubr.f32.mxu0 %v11018_v1  ;;  %v12033_v63 = vand.u32 4294901760, %v4580_v41 }
 0x1a7   : > { %10399 = vmatprep.subr.mxu1 %v11947_v56  ;;  %10396 = vmatprep.mubr.f32.mxu1 %v11391_v39  ;;  %v8703_v39 = vsel %vm460_vm0, %v10118_v48, 0 }
 0x1a8   : > { %v12045_v31 = vand.u32 4294901760, %v8703_v39  ;;  %v12053_v4 = vsub.f32 %v4580_v41, %v12033_v63 }
 0x1a9   : > { %8014 = vmatmul.mubr.f32.vlgmr.msra.gmra.mrb[0].mxu0 %v11955_v13 }
 0x1aa   : > { %8019 = vmatprep.mubr.f32.mxu0 %v11018_v1  ;;  %8036 = vmatpush1.msra.mxu0 %v7778_v30  ;;  %v8706_v30 = vsel %vm460_vm0, %v10119_v58, 0  ;;  %v12060_v55 = vsub.f32 %v8703_v39, %v12045_v31  ;;  %v12071_v6 = vand.u32 4294901760, %v12053_v4  ;;  %v9741_v58 = vld [vmem:[%s12413_s3] sm:$0xff] }
 0x1ab   : > { %8115 = vmatprep.subr.mxu0 %v11899_v15  ;;  %v12049_v15 = vand.u32 4294901760, %v8708_v40 }
 0x1ac   : > { %v12079_v47 = vand.u32 4294901760, %v12060_v55  ;;  %v5186_v10 = vsub.f32 %v12053_v4, %v12071_v6 }
 0x1ad   : > { %10397 = vmatmul.mubr.f32.vlgmr.msra.gmra.mrb[4].mxu1 %v11406_v45  ;;  %8023 = vmatmul.mubr.f32.gmra.mrb[2].mxu0 %v11970_v62  ;;  %v8805_v45 = vand.u32 4294901760, %v12037_v34  ;;  %v12067_v42 = vsub.f32 %v8708_v40, %v12049_v15 }
 0x1ae   : > { %10400 = vmatpush3.msra.mxu1 %v11947_v56  ;;  %8099 = vmatprep.mubr.f32.mxu0 %v11018_v1  ;;  %v12062_v56 = vand.u32 4294901760, %v8706_v30  ;;  %v8784_v48 = vsub.f32 %v12060_v55, %v12079_v47 }
 0x1af   : > { %10404 = vmatprep.subr.mxu1 %v11912_v36  ;;  %10401 = vmatprep.mubr.f32.mxu1 %v11357_v26  ;;  %v8806_v61 = vsub.f32 %v12037_v34, %v8805_v45  ;;  %v8811_v50 = vand.u32 4294901760, %v12067_v42 }
 0x1b0   : > { %v12104_v18 = vand.u32 4294901760, %v8784_v48 }
 0x1b1   : > { %8101 = vmatmul.mubr.f32.vlgmr.msra.gmra.mrb[0].mxu0 %v11924_v22  ;;  %v8807_v19 = vand.u32 4294901760, %v8806_v61 }
 0x1b2   : > { %8106 = vmatprep.mubr.f32.mxu0 %v11018_v1  ;;  %8117 = vmatpush1.msra.mxu0 %v11928_v16  ;;  %v12082_v16 = vsub.f32 %v8706_v30, %v12062_v56  ;;  %v9723_v30 = vld [vmem:[%s12412_s2] sm:$0xff] }
 0x1b3   : > { %8715 = vmatprep.subr.mxu0 %v12020_v53 }
 0x1b4   : > { %v12095_v41 = vand.u32 4294901760, %v12082_v16 }
 0x1b5   : > { %10402 = vmatmul.mubr.f32.vlgmr.msra.gmra.mrb[4].mxu1 %v11374_v33  ;;  %8108 = vmatmul.mubr.f32.gmra.mrb[2].mxu0 %v11939_v44 }
 0x1b6   : > { %10405 = vmatpush3.msra.mxu1 %v11912_v36  ;;  %8180 = vmatprep.mubr.f32.mxu0 %v11018_v1  ;;  %v5187_v36 = vand.u32 4294901760, %v5186_v10  ;;  %v8795_v39 = vsub.f32 %v12082_v16, %v12095_v41  ;;  %v9742_v10 = vld [vmem:[%s12413_s3 + $0x8] sm:$0xf] }
 0x1b7   : > { %10406 = vmatprep.mubr.f32.mxu1 %v11357_v26  ;;  %10409 = vmatprep.subr.mxu1 %v12033_v63  ;;  %v8812_v26 = vsub.f32 %v12067_v42, %v8811_v50 }
 0x1b8   : > { %v12118_v61 = vand.u32 4294901760, %v8795_v39 }
 0x1b9   : > { %8182 = vmatmul.mubr.f32.vlgmr.msra.gmra.mrb[0].mxu0 %v11924_v22  ;;  %v8813_v40 = vand.u32 4294901760, %v8812_v26 }
 0x1ba   : > { %8187 = vmatprep.mubr.f32.mxu0 %v11018_v1  ;;  %8717 = vmatpush1.msra.mxu0 %v12049_v15 }
 0x1bb   : > { %8808 = vmatprep.subr.mxu0 %v8807_v19 }
 0x1bd   : > { %10407 = vmatmul.mubr.f32.vlgmr.msra.gmra.mrb[4].mxu1 %v11374_v33  ;;  %8189 = vmatmul.mubr.f32.gmra.mrb[2].mxu0 %v11939_v44  ;;  %v11027_v33 = vmov 0  }
 0x1be   : > { %10410 = vmatpush3.msra.mxu1 %v12033_v63  ;;  %8780 = vmatprep.mubr.f32.mxu0 %v11018_v1 }
 0x1bf   : > { %10414 = vmatprep.subr.mxu1 %v5187_v36  ;;  %10411 = vmatprep.mubr.f32.mxu1 %v11588_v28  ;;  %v9724_v28 = vld [vmem:[%s12412_s2 + $0x8] sm:$0xf] }
 0x1c0   : > { %10932 = vset.pattern.permute.xlu1 %v11027_v33  ;;  %10931 = vset.pattern.permute.xlu0 %v11027_v33 }
 0x1c1   : > { %8786 = vmatmul.mubr.f32.vlgmr.msra.gmra.mrb[0].mxu0 %v12104_v18  ;;  %9745 = vperm.xlu1 %10932, %v9741_v58  }
 0x1c2   : > { %8791 = vmatprep.mubr.f32.mxu0 %v11018_v1  ;;  %8814 = vmatpush1.msra.mxu0 %v8813_v40 }
 0x1c3   : > { %8894 = vmatprep.subr.mxu0 %v12037_v34  ;;  %9727 = vperm.xlu0 %10931, %v9723_v30  }
 0x1c5   : > { %10412 = vmatmul.mubr.f32.vlgmr.msra.gmra.mrb[4].mxu1 %v11596_v43  ;;  %8797 = vmatmul.mubr.f32.gmra.mrb[2].mxu0 %v12118_v61  ;;  %v9780_v43 = vld [vmem:[%s12415_s5] sm:$0xf] }
 0x1c6   : > { %10415 = vmatpush3.msra.mxu1 %v5187_v36  ;;  %8877 = vmatprep.mubr.f32.mxu0 %v11018_v1 }
 0x1c7   : > { %10419 = vmatprep.subr.mxu1 %v12053_v4  ;;  %10416 = vmatprep.mubr.f32.mxu1 %v11517_v35 }
 0x1c8   : > { %9732 = vperm.xlu1 %10932, %v9724_v28   ;;  %9750 = vperm.xlu0 %10931, %v9742_v10  }
 0x1c9   : > { %8879 = vmatmul.mubr.f32.vlgmr.msra.gmra.mrb[0].mxu0 %v12045_v31 }
 0x1ca   : > { %8884 = vmatprep.mubr.f32.mxu0 %v11018_v1  ;;  %8897 = vmatpush1.msra.mxu0 %v12067_v42 }
 0x1cb   : > { %8978 = vmatprep.subr.mxu0 %v12020_v53 }
 0x1cc   : > { %9783 = vperm.xlu1 %10932, %v9780_v43  }
 0x1cd   : > { %10417 = vmatmul.mubr.f32.vlgmr.msra.gmra.mrb[4].mxu1 %v11540_v29  ;;  %8886 = vmatmul.mubr.f32.gmra.mrb[2].mxu0 %v12062_v56 }
 0x1ce   : > { %10420 = vmatpush3.msra.mxu1 %v12053_v4  ;;  %8960 = vmatprep.mubr.f32.mxu0 %v11018_v1  ;;  %v5613_v4 = vsel %vm467_vm2, %v11622_v51, 0 }
 0x1cf   : > { %10424 = vmatprep.subr.mxu1 %v12033_v63  ;;  %10421 = vmatprep.mubr.f32.mxu1 %v11538_v8  ;;  %v9811_v8 = vld [vmem:[#allocation2] sm:$0x1] }
 0x1d0   : > { %9814 = vperm.xlu0 %10931, %v9811_v8  }
 0x1d1   : > { %8963 = vmatmul.mubr.f32.vlgmr.msra.gmra.mrb[0].mxu0 %v12060_v55 }
 0x1d2   : > { %8968 = vmatprep.mubr.f32.mxu0 %v11018_v1  ;;  %8980 = vmatpush1.msra.mxu0 %v12049_v15 }
 0x1d3   : > { %9065 = vmatprep.subr.mxu0 %v8805_v45 }
 0x1d5   : > { %10422 = vmatmul.mubr.f32.vlgmr.msra.gmra.mrb[4].mxu1 %v11564_v60  ;;  %8971 = vmatmul.mubr.f32.gmra.mrb[2].mxu0 %v12082_v16  ;;  %v6130_v60 = vand.u32 4294901760, %v5613_v4 }
 0x1d6   : > { %10425 = vmatpush3.msra.mxu1 %v12033_v63  ;;  %9043 = vmatprep.mubr.f32.mxu0 %v11018_v1 }
 0x1d7   : > { %10429 = vmatprep.subr.mxu1 %v12071_v6  ;;  %10426 = vmatprep.mubr.f32.mxu1 %v11561_v3  ;;  %v6217_v3 = vsub.f32 %v5613_v4, %v6130_v60 }
 0x1d9   : > { %9047 = vmatmul.mubr.f32.vlgmr.msra.gmra.mrb[0].mxu0 %v12079_v47  ;;  %v6218_v51 = vand.u32 4294901760, %v6217_v3 }
 0x1da   : > { %9052 = vmatprep.mubr.f32.mxu0 %v11018_v1  ;;  %9069 = vmatpush1.msra.mxu0 %v8811_v50 }
 0x1db   : > { %9148 = vmatprep.subr.mxu0 %v12020_v53 }
 0x1dd   : > { %10427 = vmatmul.mubr.f32.vlgmr.msra.gmra.mrb[4].mxu1 %v11577_v20  ;;  %9056 = vmatmul.mubr.f32.gmra.mrb[2].mxu0 %v12095_v41  ;;  %v6219_v20 = vsub.f32 %v6217_v3, %v6218_v51 }
 0x1de   : > { %10430 = vmatpush3.msra.mxu1 %v12071_v6  ;;  %9132 = vmatprep.mubr.f32.mxu0 %v11018_v1 }
 0x1df   : > { %10434 = vmatprep.subr.mxu1 %v12033_v63  ;;  %10431 = vmatprep.mubr.f32.mxu1 %v11517_v35  ;;  %v6220_v53 = vand.u32 4294901760, %v6219_v20 }
 0x1e1   : > { %9134 = vmatmul.mubr.f32.vlgmr.msra.gmra.mrb[0].mxu0 %v12045_v31 }
 0x1e2   : > { %9139 = vmatprep.mubr.f32.mxu0 %v11018_v1  ;;  %9150 = vmatpush1.msra.mxu0 %v12049_v15 }
 0x1e5   : > { %10432 = vmatmul.mubr.f32.vlgmr.msra.gmra.mrb[4].mxu1 %v11540_v29  ;;  %9141 = vmatmul.mubr.f32.gmra.mrb[2].mxu0 %v12062_v56 }
 0x1e6   : > { %10435 = vmatpush3.msra.mxu1 %v12033_v63  ;;  %9213 = vmatprep.mubr.f32.mxu0 %v11018_v1 }
 0x1e7   : > { %10436 = vmatprep.mubr.f32.mxu1 %v11517_v35  ;;  %10439 = vmatprep.subr.mxu1 %v6130_v60 }
 0x1e9   : > { %9215 = vmatmul.mubr.f32.vlgmr.msra.gmra.mrb[0].mxu0 %v12045_v31 }
 0x1ea   : > { %9220 = vmatprep.mubr.f32.mxu0 %v11018_v1  ;;  %v6646_v1 = vsel %vm467_vm2, %v11754_v17, 0 }
 0x1eb   : > { %v7163_v35 = vand.u32 4294901760, %v6646_v1 }
 0x1ed   : > { %10437 = vmatmul.mubr.f32.vlgmr.msra.gmra.mrb[4].mxu1 %v11540_v29  ;;  %9222 = vmatmul.mubr.f32.gmra.mrb[2].mxu0 %v12062_v56  ;;  %v7250_v29 = vsub.f32 %v6646_v1, %v7163_v35 }
 0x1ee   : > { %10440 = vmatpush3.msra.mxu1 %v6130_v60  ;;  %10441 = vmatprep.mubr.f32.mxu1 %v11728_v9 }
 0x1ef   : > { %10444 = vmatprep.subr.mxu1 %v6220_v53  ;;  %v7251_v9 = vand.u32 4294901760, %v7250_v29 }
 0x1f5   : > { %10442 = vmatmul.mubr.f32.vlgmr.msra.gmra.mrb[4].mxu1 %v11735_v23  ;;  %v7679_v23 = vsel %vm467_vm2, %v11881_v14, 0 }
 0x1f6   : > { %10445 = vmatpush3.msra.mxu1 %v6220_v53  ;;  %10446 = vmatprep.mubr.f32.mxu1 %v11676_v2  ;;  %v8196_v17 = vand.u32 4294901760, %v7679_v23 }
 0x1f7   : > { %10449 = vmatprep.subr.mxu1 %v6217_v3 }
 0x1fd   : > { %10447 = vmatmul.mubr.f32.vlgmr.msra.gmra.mrb[4].mxu1 %v11689_v5 }
 0x1fe   : > { %10450 = vmatpush3.msra.mxu1 %v6217_v3  ;;  %10451 = vmatprep.mubr.f32.mxu1 %v11687_v37  ;;  %v7252_v37 = vsub.f32 %v7250_v29, %v7251_v9 }
 0x1ff   : > { %10454 = vmatprep.subr.mxu1 %v6130_v60 }
 0x205   : > { %10452 = vmatmul.mubr.f32.vlgmr.msra.gmra.mrb[4].mxu1 %v11708_v24 }
 0x206   : > { %10455 = vmatpush3.msra.mxu1 %v6130_v60  ;;  %10456 = vmatprep.mubr.f32.mxu1 %v11705_v25  ;;  %v7253_v25 = vand.u32 4294901760, %v7252_v37 }
 0x207   : > { %10459 = vmatprep.subr.mxu1 %v6218_v51 }
 0x20d   : > { %10457 = vmatmul.mubr.f32.vlgmr.msra.gmra.mrb[4].mxu1 %v11718_v27 }
 0x20e   : > { %10460 = vmatpush3.msra.mxu1 %v6218_v51  ;;  %10461 = vmatprep.mubr.f32.mxu1 %v11676_v2 }
 0x20f   : > { %10464 = vmatprep.subr.mxu1 %v6130_v60 }
 0x215   : > { %10462 = vmatmul.mubr.f32.vlgmr.msra.gmra.mrb[4].mxu1 %v11689_v5 }
 0x216   : > { %10465 = vmatpush3.msra.mxu1 %v6130_v60  ;;  %10466 = vmatprep.mubr.f32.mxu1 %v11676_v2 }
 0x217   : > { %10469 = vmatprep.subr.mxu1 %v7163_v35 }
 0x21d   : > { %10467 = vmatmul.mubr.f32.vlgmr.msra.gmra.mrb[4].mxu1 %v11689_v5 }
 0x21e   : > { %10470 = vmatpush3.msra.mxu1 %v7163_v35  ;;  %10471 = vmatprep.mubr.f32.mxu1 %v11858_v7 }
 0x21f   : > { %10474 = vmatprep.subr.mxu1 %v7253_v25 }
 0x225   : > { %10472 = vmatmul.mubr.f32.vlgmr.msra.gmra.mrb[4].mxu1 %v11866_v38 }
 0x226   : > { %10475 = vmatpush3.msra.mxu1 %v7253_v25  ;;  %10476 = vmatprep.mubr.f32.mxu1 %v11798_v57 }
 0x227   : > { %10479 = vmatprep.subr.mxu1 %v7250_v29 }
 0x228   : > { %v12199_v24 = vpop.f32.mrb[0].mxu1 }
 0x229   : > { %v12201_v27 = vpop.f32.mrb[1].mxu1 }
 0x22d   : > { %10477 = vmatmul.mubr.f32.vlgmr.msra.gmra.mrb[4].mxu1 %v11814_v12 }
 0x22e   : > { %10480 = vmatpush3.msra.mxu1 %v7250_v29  ;;  %10481 = vmatprep.mubr.f32.mxu1 %v11812_v0  ;;  %v8283_v0 = vsub.f32 %v7679_v23, %v8196_v17 }
 0x22f   : > { %10484 = vmatprep.subr.mxu1 %v7163_v35 }
 0x230   : > { %v8284_v7 = vand.u32 4294901760, %v8283_v0 }
 0x234   : > { %v12205_v2 = vpop.f32.mrb[2].mxu1 }
 0x235   : > { %v12207_v5 = vpop.f32.mrb[3].mxu1  ;;  %10482 = vmatmul.mubr.f32.vlgmr.msra.gmra.mrb[4].mxu1 %v11834_v54 }
 0x236   : > { %10485 = vmatpush3.msra.mxu1 %v7163_v35  ;;  %10486 = vmatprep.mubr.f32.mxu1 %v11831_v52  ;;  %v8285_v52 = vsub.f32 %v8283_v0, %v8284_v7 }
 0x237   : > { %10489 = vmatprep.subr.mxu1 %v7251_v9 }
 0x238   : > { %v8286_v54 = vand.u32 4294901760, %v8285_v52 }
 0x23d   : > { %10487 = vmatmul.mubr.f32.vlgmr.msra.gmra.mrb[4].mxu1 %v11849_v49 }
 0x23e   : > { %10490 = vmatpush3.msra.mxu1 %v7251_v9  ;;  %10491 = vmatprep.mubr.f32.mxu1 %v11798_v57 }
 0x23f   : > { %10494 = vmatprep.subr.mxu1 %v7163_v35 }
 0x240   : > { %v9746_v34 = vpop.permute.xlu1 %9745 }
 0x242   : > { %v9728_v63 = vpop.permute.xlu0 %9727 }
 0x245   : > { %10492 = vmatmul.mubr.f32.vlgmr.msra.gmra.mrb[4].mxu1 %v11814_v12 }
 0x246   : > { %10495 = vmatpush3.msra.mxu1 %v7163_v35  ;;  %10496 = vmatprep.mubr.f32.mxu1 %v11798_v57  ;;  %v8712_v57 = vsel %vm467_vm2, %v12002_v59, 0  ;;  %v9817_v35 = vlaneseq }
 0x247   : > { %10499 = vmatprep.subr.mxu1 %v8196_v17  ;;  %v9733_v42 = vpop.permute.xlu1 %9732  ;;  %v9751_v50 = vpop.permute.xlu0 %9750 }
 0x24b   : > { %v9784_v30 = vpop.permute.xlu1 %9783 }
 0x24d   : > { %10497 = vmatmul.mubr.f32.vlgmr.msra.gmra.mrb[4].mxu1 %v11814_v12  ;;  %v9229_v12 = vand.u32 4294901760, %v8712_v57 }
 0x24e   : > { %10500 = vmatpush3.msra.mxu1 %v8196_v17  ;;  %10501 = vmatprep.mubr.f32.mxu1 %v11979_v32 }
 0x24f   : > { %10504 = vmatprep.subr.mxu1 %v8286_v54  ;;  %v9316_v49 = vsub.f32 %v8712_v57, %v9229_v12 }
 0x251   : > { %v9317_v38 = vand.u32 4294901760, %v9316_v49 }
 0x253   : > { %v9318_v14 = vsub.f32 %v9316_v49, %v9317_v38 }
 0x255   : > { %10502 = vmatmul.mubr.f32.vlgmr.msra.gmra.mrb[4].mxu1 %v11987_v21 }
 0x256   : > { %10505 = vmatpush3.msra.mxu1 %v8286_v54  ;;  %10506 = vmatprep.mubr.f32.mxu1 %v11924_v22  ;;  %v9815_v54 = vpop.permute.xlu0 %9814 }
 0x257   : > { %10509 = vmatprep.subr.mxu1 %v8283_v0 }
 0x25d   : > { %10507 = vmatmul.mubr.f32.vlgmr.msra.gmra.mrb[4].mxu1 %v11939_v44 }
 0x25e   : > { %10510 = vmatpush3.msra.mxu1 %v8283_v0  ;;  %10511 = vmatprep.mubr.f32.mxu1 %v11937_v11  ;;  %v9319_v11 = vand.u32 4294901760, %v9318_v14 }
 0x25f   : > { %10514 = vmatprep.subr.mxu1 %v8196_v17 }
 0x265   : > { %10512 = vmatmul.mubr.f32.vlgmr.msra.gmra.mrb[4].mxu1 %v11958_v46 }
 0x266   : > { %10515 = vmatpush3.msra.mxu1 %v8196_v17  ;;  %10516 = vmatprep.mubr.f32.mxu1 %v11955_v13 }
 0x267   : > { %10519 = vmatprep.subr.mxu1 %v8284_v7 }
 0x26d   : > { %10517 = vmatmul.mubr.f32.vlgmr.msra.gmra.mrb[4].mxu1 %v11970_v62 }
 0x26e   : > { %10520 = vmatpush3.msra.mxu1 %v8284_v7  ;;  %10521 = vmatprep.mubr.f32.mxu1 %v11924_v22 }
 0x26f   : > { %10524 = vmatprep.subr.mxu1 %v8196_v17 }
 0x275   : > { %10522 = vmatmul.mubr.f32.vlgmr.msra.gmra.mrb[4].mxu1 %v11939_v44 }
 0x276   : > { %10525 = vmatpush3.msra.mxu1 %v8196_v17  ;;  %10526 = vmatprep.mubr.f32.mxu1 %v11924_v22 }
 0x277   : > { %10529 = vmatprep.subr.mxu1 %v9229_v12 }
 0x27d   : > { %10527 = vmatmul.mubr.f32.vlgmr.msra.gmra.mrb[4].mxu1 %v11939_v44 }
 0x27e   : > { %10530 = vmatpush3.msra.mxu1 %v9229_v12  ;;  %10531 = vmatprep.mubr.f32.mxu1 %v12104_v18 }
 0x27f   : > { %10534 = vmatprep.subr.mxu1 %v9319_v11 }
 0x285   : > { %10532 = vmatmul.mubr.f32.vlgmr.msra.gmra.mrb[4].mxu1 %v12118_v61 }
 0x286   : > { %10535 = vmatpush3.msra.mxu1 %v9319_v11  ;;  %10536 = vmatprep.mubr.f32.mxu1 %v12045_v31 }
 0x287   : > { %10539 = vmatprep.subr.mxu1 %v9316_v49 }
 0x28d   : > { %10537 = vmatmul.mubr.f32.vlgmr.msra.gmra.mrb[4].mxu1 %v12062_v56 }
 0x28e   : > { %10540 = vmatpush3.msra.mxu1 %v9316_v49  ;;  %10541 = vmatprep.mubr.f32.mxu1 %v12060_v55 }
 0x28f   : > { %10544 = vmatprep.subr.mxu1 %v9229_v12 }
 0x295   : > { %10542 = vmatmul.mubr.f32.vlgmr.msra.gmra.mrb[4].mxu1 %v12082_v16 }
 0x296   : > { %10545 = vmatpush3.msra.mxu1 %v9229_v12  ;;  %10546 = vmatprep.mubr.f32.mxu1 %v12079_v47 }
 0x297   : > { %10549 = vmatprep.subr.mxu1 %v9317_v38 }
 0x29d   : > { %10547 = vmatmul.mubr.f32.vlgmr.msra.gmra.mrb[4].mxu1 %v12095_v41 }
 0x29e   : > { %10550 = vmatpush3.msra.mxu1 %v9317_v38  ;;  %10551 = vmatprep.mubr.f32.mxu1 %v12045_v31 }
 0x29f   : > { %10554 = vmatprep.subr.mxu1 %v9229_v12 }
 0x2a5   : > { %10552 = vmatmul.mubr.f32.vlgmr.msra.gmra.mrb[4].mxu1 %v12062_v56 }
 0x2a6   : > { %10555 = vmatpush3.msra.mxu1 %v9229_v12  ;;  %10556 = vmatprep.mubr.f32.mxu1 %v12045_v31 }
 0x2ad   : > { %10557 = vmatmul.mubr.f32.vlgmr.msra.gmra.mrb[4].mxu1 %v12062_v56 }
 0x2bc   : > { %v9216_v22 = vpop.f32.mrb[0].mxu0 }
 0x2bd   : > { %v10561_v44 = vadd.f32 %v9216_v22, %v12199_v24  ;;  %v9218_v13 = vpop.f32.mrb[1].mxu0 }
 0x2be   : > { %v10562_v46 = vadd.f32 %v9218_v13, %v12201_v27  ;;  %v9818_v27 = vshrl.u32 %v9817_v35, 7  ;;  %v9824_v13 = vld [vmem:[%s12414_s4] sm:$0x7] }
 0x2bf   : > { %v9735_v15 = vmul.f32 %v10561_v44, %v9728_v63 }
 0x2c0   : > { %v9223_v62 = vpop.f32.mrb[2].mxu0  ;;  %v9736_v45 = vmul.f32 %v10562_v46, %v9728_v63  ;;  %v12281_v7 = vsub.s32 0, %v9818_v27  ;;  %v9832_v46 = vsub.s32 1, %v9818_v27 }
 0x2c1   : > { %v10563_v32 = vadd.f32 %v9223_v62, %v12205_v2  ;;  %v9225_v21 = vpop.f32.mrb[3].mxu0  ;;  %v9753_v55 = vadd.f32 %v9746_v34, %v9735_v15 }
 0x2c2   : > { %v10564_v59 = vadd.f32 %v9225_v21, %v12207_v5  ;;  %v9754_v31 = vadd.f32 %v9746_v34, %v9736_v45  ;;  %v9820_v38 = vrot.slane %v9815_v54, %v12281_v7  ;;  %v9836_v45 = vsub.s32 2, %v9818_v27 }
 0x2c3   : > { %v12248_v56 = vmax.f32 %v9753_v55, 0.0  ;;  %v9738_v47 = vmul.f32 %v10563_v32, %v9733_v42  ;;  %v9829_v32 = vrot.slane %v9824_v13, %v12281_v7 }
 0x2c4   : > { %v12250_v6 = vmax.f32 %v9754_v31, 0.0  ;;  %v9739_v16 = vmul.f32 %v10564_v59, %v9733_v42 }
 0x2c5   : > { %v12252_v19 = vadd.f32 %v9751_v50, %v9738_v47  ;;  %v9768_v41 = vrot.slane %v12248_v56, 4 }
 0x2c6   : > { %v12254_v48 = vadd.f32 %v9751_v50, %v9739_v16  ;;  %v9769_v26 = vrot.slane %v12250_v6, 4  ;;  %v9837_v16 = vrot.slane %v9824_v13, %v9836_v45 }
 0x2c7   : > { %v9762_v36 = vmax.f32 %v12252_v19, 0.0  ;;  %v9774_v39 = vadd.f32 %v9768_v41, %v12248_v56 }
 0x2c8   : > { %v9763_v18 = vmax.f32 %v12254_v48, 0.0  ;;  %v9775_v40 = vadd.f32 %v9769_v26, %v12250_v6 }
 0x2c9   : > { %v12264_v58 = vadd.f32 %v9774_v39, %v9762_v36 }
 0x2ca   : > { %v12268_v33 = vadd.f32 %v9775_v40, %v9763_v18 }
 0x2cb   : > { %v9786_v61 = vmul.f32 %v9784_v30, %v12264_v58 }
 0x2cc   : > { %v9787_v28 = vmul.f32 %v9784_v30, %v12268_v33 }
 0x2cd   : > { %v9789_v10 = vsel %vm467_vm2, %v9786_v61, 0.0 }
 0x2ce   : > { %v9796_v43 = vsel %vm467_vm2, %v9787_v28, 0.0  ;;  %v9790_v8 = vrot.slane %v9789_v10, 4 }
 0x2cf   : > { %v9797_v4 = vrot.slane %v9796_v43, 4 }
 0x2d0   : > { %v9791_v3 = vadd.f32 %v9790_v8, %v9789_v10 }
 0x2d1   : > { %v9798_v51 = vadd.f32 %v9797_v4, %v9796_v43 }
 0x2d2   : > { %v9792_v9 = vrot.slane %v9791_v3, 2 }
 0x2d3   : > { %v9799_v37 = vrot.slane %v9798_v51, 2 }
 0x2d4   : > { %v9793_v5 = vadd.f32 %v9792_v9, %v9791_v3 }
 0x2d5   : > { %v9800_v23 = vadd.f32 %v9799_v37, %v9798_v51 }
 0x2d6   : > { %v9794_v57 = vrot.slane %v9793_v5, 1 }
 0x2d7   : > { %v9801_v12 = vrot.slane %v9800_v23, 1 }
 0x2d8   : > { %v9795_v11 = vadd.f32 %v9794_v57, %v9793_v5 }
 0x2d9   : > { %v9802_v22 = vadd.f32 %v9801_v12, %v9800_v23 }
 0x2da   : > { %v9821_v21 = vadd.f32 %v9820_v38, %v9795_v11 }
 0x2db   : > { %v9822_v59 = vadd.f32 %v9820_v38, %v9802_v22 }
 0x2dc   : > { %v9841_v31 = vadd.f32 %v9829_v32, %v9821_v21 }
 0x2de   : > { %v9845_v41 = vsel %vm9844_vm11, %v9841_v31, -inf }
 0x380   : > { %v10558_v60 = vpop.f32.mrb[4].mxu1 }
 0x381   : > { %v9707_v20 = vpop.f32.mrb[5].mxu1  ;;  %v9740_v53 = vmul.f32 %v10558_v60, %v9733_v42 }
 0x382   : > { %v9737_v1 = vmul.f32 %v9728_v63, %v9707_v20 }
 0x383   : > { %v12274_v25 = vadd.f32 %v9751_v50, %v9740_v53 }
 0x384   : > { %v9755_v29 = vadd.f32 %v9746_v34, %v9737_v1  ;;  %v9833_v34 = vrot.slane %v9824_v13, %v9832_v46 }
 0x385   : > { %v9764_v17 = vmax.f32 %v12274_v25, 0.0 }
 0x386   : > { %v12276_v24 = vmax.f32 %v9755_v29, 0.0  ;;  %v9842_v42 = vadd.f32 %v9833_v34, %v9822_v59 }
 0x388   : > { %v9770_v2 = vrot.slane %v12276_v24, 4  ;;  %v9846_v26 = vsel %vm9844_vm11, %v9842_v42, -inf }
 0x389   : > { %v9849_v40 = vmax.f32 %v9845_v41, %v9846_v26 }
 0x38a   : > { %v9776_v0 = vadd.f32 %v9770_v2, %v12276_v24 }
 0x38c   : > { %v12285_v52 = vadd.f32 %v9776_v0, %v9764_v17 }
 0x38e   : > { %v9788_v49 = vmul.f32 %v9784_v30, %v12285_v52 }
 0x390   : > { %v9804_v14 = vsel %vm9803_vm10, %v9788_v49, 0.0 }
 0x391   : > { %v9805_v44 = vrot.slane %v9804_v14, 4 }
 0x393   : > { %v9806_v62 = vadd.f32 %v9805_v44, %v9804_v14 }
 0x395   : > { %v9807_v63 = vrot.slane %v9806_v62, 2 }
 0x397   : > { %v9808_v15 = vadd.f32 %v9807_v63, %v9806_v62  ;;  %v9895_v62 = vld [vmem:[%s12417_s7] sm:$0xf] }
 0x399   : > { %v9809_v55 = vrot.slane %v9808_v15, 1 }
 0x39b   : > { %v9810_v47 = vadd.f32 %v9809_v55, %v9808_v15  ;;  %v9904_v15 = vld [vmem:[%s12418_s8] sm:$0x1] }
 0x39d   : > { %v9823_v50 = vadd.f32 %v9820_v38, %v9810_v47 }
 0x39f   : > { %v9843_v39 = vadd.f32 %v9837_v16, %v9823_v50 }
 0x3a1   : > { %v9848_v30 = vsel %vm9847_vm12, %v9843_v39, -inf }
 0x3a2   : > { %v9850_v61 = vmax.f32 %v9849_v40, %v9848_v30 }
 0x3a4   : > { %9851 = vmax.xlane.f32.xlu1 %v9850_v61 }
 0x431   : > { %v9852_v28 = vpop.xlane.xlu1 %9851 }
 0x432   : > { %v9853_v10 = vsub.f32 %v9841_v31, %v9852_v28  ;;  %v9854_v43 = vsub.f32 %v9842_v42, %v9852_v28  ;;  %v9855_v8 = vsub.f32 %v9843_v39, %v9852_v28 }
 0x434   : > { %v9856_v4 = vmul.f32 1.442695, %v9853_v10  ;;  %v9858_v60 = vmul.f32 1.442695, %v9854_v43  ;;  %v9860_v3 = vmul.f32 1.442695, %v9855_v8 }
 0x436   : > { %10934 = vpow2.f32 %v9856_v4  ;;  %v9927_v4 = vld [vmem:[%s12419_s9] sm:$0x1] }
 0x437   : > { %10936 = vpow2.f32 %v9858_v60 }
 0x438   : > { %10938 = vpow2.f32 %v9860_v3  ;;  %v9929_v3 = vld [vmem:[%s12420_s10] sm:$0x1] }
 0x440   : > { %v10935_v51 = vpop.eup %10934 }
 0x441   : > { %v10937_v20 = vpop.eup %10936  ;;  %v9862_v53 = vsel %vm9844_vm11, %v10935_v51, 0.0 }
 0x442   : > { %v10939_v1 = vpop.eup %10938  ;;  %v9863_v35 = vsel %vm9844_vm11, %v10937_v20, 0.0 }
 0x443   : > { %v9864_v29 = vadd.f32 %v9863_v35, %v9862_v53  ;;  %v9865_v9 = vsel %vm9847_vm12, %v10939_v1, 0.0  ;;  %v9932_v35 = vld [vmem:[%s12421_s11] sm:$0xf] }
 0x445   : > { %v9866_v37 = vadd.f32 %v9865_v9, %v9864_v29  ;;  %v10122_v9 = vld [vmem:[%s12421_s11 + $0x8] sm:$0xf] }
 0x447   : > { %9867 = vadd.xlane.f32.xlu0 %v9866_v37 }
 0x4d4   : > { %v9868_v27 = vpop.xlane.xlu0 %9867 }
 0x4d5   : > { %10940 = vrcp.f32 %v9868_v27 }
 0x4df   : > { %v10941_v2 = vpop.eup %10940 }
 0x4e0   : > { %v9870_v5 = vmul.f32 %v10941_v2, %v10935_v51  ;;  %v9871_v23 = vmul.f32 %v10941_v2, %v10937_v20  ;;  %v9872_v0 = vmul.f32 %v10941_v2, %v10939_v1  ;;  %v10120_v1 = vld [vmem:[%s12421_s11 + $0x4] sm:$0xf] }
 0x4e2   : > { %v9876_v54 = vrot.slane %v9870_v5, %v12281_v7  ;;  %v9880_v57 = vrot.slane %v9871_v23, %v12281_v7  ;;  %v9884_v12 = vrot.slane %v9872_v0, %v12281_v7 }
 0x4e4   : > { %v9885_v49 = vmul.f32 %v9876_v54, %v12264_v58  ;;  %v9886_v38 = vmul.f32 %v9880_v57, %v12268_v33  ;;  %v9887_v14 = vmul.f32 %v9884_v12, %v12285_v52  ;;  %v9941_v54 = vld [vmem:[%s12422_s12] sm:$0xf] }
 0x4e6   : > { %v9888_v11 = vsel %vm467_vm2, %v9885_v49, 0.0  ;;  %v9889_v22 = vsel %vm467_vm2, %v9886_v38, 0.0  ;;  %v9891_v13 = vsel %vm9803_vm10, %v9887_v14, 0.0  ;;  %v10123_v14 = vld [vmem:[%s12422_s12 + $0x8] sm:$0xf] }
 0x4e7   : > { %v9890_v44 = vadd.f32 %v9889_v22, %v9888_v11 }
 0x4e9   : > { %v9892_v46 = vadd.f32 %v9891_v13, %v9890_v44 }
 0x4eb   : > { %9893 = vadd.xlane.f32.xlu0 %v9892_v46 }
 0x578   : > { %v9894_v32 = vpop.xlane.xlu0 %9893 }
 0x579   : > { %v9896_v21 = vmul.f32 %v9895_v62, %v9894_v32 }
 0x57b   : > { %v9897_v58 = vsel %vm9803_vm10, %v9896_v21, 0.0 }
 0x57c   : > { %v9898_v33 = vrot.slane %v9897_v58, 4 }
 0x57e   : > { %v9899_v59 = vadd.f32 %v9898_v33, %v9897_v58 }
 0x580   : > { %v9900_v52 = vrot.slane %v9899_v59, 2 }
 0x582   : > { %v9901_v63 = vadd.f32 %v9900_v52, %v9899_v59 }
 0x584   : > { %v9902_v34 = vrot.slane %v9901_v63, 1 }
 0x586   : > { %v9903_v45 = vadd.f32 %v9902_v34, %v9901_v63 }
 0x588   : > { %v9905_v55 = vadd.f32 %v9904_v15, %v9903_v45 }
 0x58a   : > { %v9906_v31 = vsel %vm9847_vm12, %v9905_v55, 0.0 }
 0x58b   : > { %9907 = vadd.xlane.f32.xlu1 %v9906_v31 }
 0x618   : > { %v9908_v42 = vpop.xlane.xlu1 %9907 }
 0x619   : > { %v9910_v47 = vmul.f32 0.03125, %v9908_v42 }
 0x61b   : > { %v9911_v16 = vsub.f32 %v9905_v55, %v9910_v47 }
 0x61d   : > { %v9912_v50 = vmul.f32 %v9911_v16, %v9911_v16 }
 0x61f   : > { %v9913_v41 = vsel %vm9847_vm12, %v9912_v50, 0.0 }
 0x620   : > { %9914 = vadd.xlane.f32.xlu0 %v9913_v41 }
 0x6ad   : > { %v9915_v26 = vpop.xlane.xlu0 %9914 }
 0x6ae   : > { %v9916_v39 = vmul.f32 0.03125, %v9915_v26 }
 0x6b0   : > { %v9917_v40 = vadd.f32 1e-05, %v9916_v39 }
 0x6b2   : > { %10942 = vrsqrt.f32 %v9917_v40  ;;  %vm9920_vm13 = vcmp.eq.f32.partialorder %v9917_v40, inf  ;;  %v9923_v28 = vand.u32 2147483648, %v9917_v40  ;;  %vm9922_vm14 = vcmp.eq.f32.partialorder %v9917_v40, 0.0 }
 0x6bc   : > { %v10943_v30 = vpop.eup %10942 }
 0x6bd   : > { %v9919_v61 = vmul.f32 %v10943_v30, %v9917_v40 }
 0x6bf   : > { %v9921_v10 = vsel %vm9920_vm13, %v9917_v40, %v9919_v61 }
 0x6c0   : > { %v9924_v43 = vsel %vm9922_vm14, %v9923_v28, %v9921_v10 }
 0x6c1   : > { %10944 = vrcp.f32 %v9924_v43 }
 0x6cb   : > { %v10945_v8 = vpop.eup %10944 }
 0x6cc   : > { %v9926_v60 = vmul.f32 %v10945_v8, %v9911_v16 }
 0x6ce   : > { %v9928_v51 = vmul.f32 %v9927_v4, %v9926_v60 }
 0x6d0   : > { %v9930_v20 = vadd.f32 %v9929_v3, %v9928_v51 }
 0x6d2   : > { %v9931_v53 = vmax.f32 %v9930_v20, 0.0 }
 0x6d4   : > { %v9936_v29 = vrot.slane %v9931_v53, %v12281_v7  ;;  %v10121_v7 = vld [vmem:[%s12422_s12 + $0x4] sm:$0xf] }
 0x6d6   : > { %v9945_v37 = vmul.f32 %v10120_v1, %v9936_v29  ;;  %v9937_v27 = vmul.f32 %v9936_v29, %v9932_v35  ;;  %v9954_v23 = vmul.f32 %v10122_v9, %v9936_v29 }
 0x6d8   : > { %v9946_v2 = vsel %vm9803_vm10, %v9945_v37, 0.0  ;;  %v9938_v5 = vsel %vm9803_vm10, %v9937_v27, 0.0  ;;  %v9955_v0 = vsel %vm9803_vm10, %v9954_v23, 0.0 }
 0x6d9   : > { %9947 = vadd.xlane.f32.xlu0 %v9946_v2  ;;  %9939 = vadd.xlane.f32.xlu1 %v9938_v5 }
 0x6dd   : > { %9956 = vadd.xlane.f32.xlu1 %v9955_v0 }
 0x766   : > { %v9948_v57 = vpop.xlane.xlu0 %9947  ;;  %v9940_v12 = vpop.xlane.xlu1 %9939 }
 0x767   : > { %v9951_v49 = vadd.f32 %v10121_v7, %v9948_v57  ;;  %v9942_v38 = vadd.f32 %v9941_v54, %v9940_v12 }
 0x769   : > { %v9961_v22 = vmax.f32 %v9942_v38, %v9951_v49 }
 0x76a   : > { %v9957_v11 = vpop.xlane.xlu1 %9956 }
 0x76b   : > { %v9960_v44 = vadd.f32 %v10123_v14, %v9957_v11 }
 0x76d   : > { %v9962_v13 = vmax.f32 %v9961_v22, %v9960_v44 }
 0x76f   : > { %v9963_v46 = vsub.f32 %v9942_v38, %v9962_v13  ;;  %v9966_v62 = vsub.f32 %v9951_v49, %v9962_v13  ;;  %v9969_v32 = vsub.f32 %v9960_v44, %v9962_v13 }
 0x771   : > { %v9964_v21 = vmul.f32 1.442695, %v9963_v46  ;;  %v9967_v58 = vmul.f32 1.442695, %v9966_v62  ;;  %v9970_v33 = vmul.f32 1.442695, %v9969_v32 }
 0x773   : > { %10946 = vpow2.f32 %v9964_v21 }
 0x774   : > { %10948 = vpow2.f32 %v9967_v58 }
 0x775   : > { %10950 = vpow2.f32 %v9970_v33 }
 0x77d   : > { %v10947_v59 = vpop.eup %10946 }
 0x77e   : > { %v10949_v52 = vpop.eup %10948 }
 0x77f   : > { %v9972_v63 = vadd.f32 %v10949_v52, %v10947_v59  ;;  %v10951_v34 = vpop.eup %10950 }
 0x781   : > { %v9973_v15 = vadd.f32 %v10951_v34, %v9972_v63 }
 0x783   : > { %10952 = vrcp.f32 %v9973_v15 }
 0x78d   : > { %v10953_v45 = vpop.eup %10952 }
 0x78e   : > { %v9977_v55 = vmul.f32 %v10953_v45, %v10949_v52  ;;  %v9976_v31 = vmul.f32 %v10953_v45, %v10947_v59  ;;  %v9978_v42 = vmul.f32 %v10953_v45, %v10951_v34 }
 0x790   : > { %9989 = vperm.xlu0 %10931, %v9977_v55   ;;  %9981 = vperm.xlu1 %10932, %v9976_v31  }
 0x794   : > { %10010 = vperm.xlu1 %10932, %v9978_v42  }
 0x80f   : > { %v9990_v47 = vpop.permute.xlu0 %9989  ;;  %v9982_v16 = vpop.permute.xlu1 %9981 }
 0x810   : > { %v9991_v50 = vrot.slane %v9990_v47, 4  ;;  %v9984_v40 = vmul.f32 %v9982_v16, %v12248_v56  ;;  %v9985_v30 = vmul.f32 %v9982_v16, %v12250_v6  ;;  %v9986_v8 = vmul.f32 %v9982_v16, %v12276_v24 }
 0x812   : > { %v9993_v41 = vmul.f32 %v9991_v50, %v12248_v56  ;;  %v9994_v26 = vmul.f32 %v9991_v50, %v12250_v6  ;;  %v9995_v39 = vmul.f32 %v9991_v50, %v12276_v24 }
 0x813   : > { %v10011_v61 = vpop.permute.xlu1 %10010 }
 0x814   : > { %v9999_v28 = vrot.slane %v9993_v41, 4  ;;  %v10000_v10 = vrot.slane %v9994_v26, 4  ;;  %v10001_v43 = vrot.slane %v9995_v39, 4  ;;  %v10013_v4 = vmul.f32 %v10011_v61, %v9762_v36 }
 0x815   : > { %v10014_v60 = vmul.f32 %v10011_v61, %v9763_v18  ;;  %v10015_v56 = vmul.f32 %v10011_v61, %v9764_v17 }
 0x816   : > { %v10005_v3 = vadd.f32 %v9999_v28, %v9984_v40  ;;  %v10006_v51 = vadd.f32 %v10000_v10, %v9985_v30  ;;  %v10007_v20 = vadd.f32 %v10001_v43, %v9986_v8 }
 0x818   : > { %v10016_v6 = vadd.f32 %v10013_v4, %v10005_v3  ;;  %v10017_v53 = vadd.f32 %v10014_v60, %v10006_v51  ;;  %v10018_v24 = vadd.f32 %v10015_v56, %v10007_v20 }
 0x81a   : > { %v10021_v1 = vcombine.low %v10016_v6, %v10017_v53  ;;  %10024 = vst.msk [vmem:[%s435_s24 + $0x8] sm:$0xf] %vm9803_vm10, %v10018_v24 }
 0x81c   : > { %10023 = vst [vmem:[%s435_s24] sm:$0xff] %v10021_v1 }
 0x81d   : > { %10967 = shalt.err (!%p10964_p3)
}
 0x81e   : > { %s10968_s21 = scalar_lea.hbm %s12366_s16, 192  ;;  %s10972_s26 = scalar_lea.hbm %s12423_s13, 384 }
 0x81f   : > { %p10969_p4 = scmp.ne.s32.totalorder %s12366_s16, %s10968_s21  ;;  %p10973_p9 = scmp.lt.u32.totalorder %s12366_s16, %s12423_s13 }
 0x820   : > { %p10974_p10 = scmp.lt.u32.totalorder %s10972_s26, %s10968_s21  ;;  %p10976_p12 = scmp.lt.u32.totalorder %s10968_s21, %s12366_s16 }
 0x821   : > { %p10970_p7 = pnand %p10969_p4, %p11140_p5 }
 0x822   : > { %p10975_p11 = por %p10974_p10, %p10973_p9 }
 0x823   : > { %p10971_p8 = pneg %p10970_p7 }
 0x824   : > { %p10977_p13 = por %p10976_p12, %p10975_p11 }
 0x826   : > { %p10978_p0 = pnand %p10977_p13, %p10971_p8 }
 0x828   : > { %10981 = shalt.err (!%p10978_p0)
}
 0x829   : > { %10882 = dma.vmem_to_hbm [thread:$0]  (%p11140_p5), %s12368_s25, 192, %s12366_s16, %s10026_s6  }
 0x82a PF: > { %p10888_p1 = scmp.ge.s32.totalorder %s11016_s30, 2  ;;  %s10052_s1 = sand.u32 1, %s11004_s27  }
 0x82b   : > { %s10053_s17 = scalar_lea.sflag [#allocation4], %s10052_s1 }
 0x82c   : > { %p10885_p2 = pnand %p10888_p1, %p11144_p6 }
 0x82e   : > { %10999 = dma.done.wait (!%p10885_p2), %s10053_s17, 192  }
 0x82f   : > { %11001 = vsyncadd (!%p10885_p2), %s10053_s17, 4294967104  ;;  %p25_p3 = scmp.ge.s32.totalorder %s11127_s15, 4   ;;  %s12430_s27 = smov %s11008_s28 }
 0x830   : > { %s12431_s28 = smov %s11012_s29  ;;  %s12432_s29 = smov %s11138_s18 }
 0x831   : > { %s12433_s30 = smov %s11127_s15  ;;  %27 = sbr.rel (!%p25_p3) target bundleno = 6 (0x6), region = 119 }
 0x838   :  { %10058 = vsyncpa [#allocation4], 1 }
 0x839   :  { %10060 = vsyncpa [#allocation4 + $0x1], 1 }

</bundles_post_ra>
